<compile_context>
chip_gen: v7x
topology: tpu7x:2x2x1
jax: 0.10.0
libtpu: 0.0.40
codegen_flags: <defaults>
</compile_context>

<pallas_src>
import functools
import math

import jax
import jax.numpy as jnp
from jax.experimental import pallas as pl
from jax.experimental.pallas import tpu as pltpu


# ------------------------------ fused kernel --------------------------------

def _mha_fused_kernel(q_ref, k_ref, v_ref,
                      wq_ref, wk_ref, wv_ref, wo_t_ref,
                      bq_ref, bk_ref, bv_ref, bo_ref,
                      o_ref, *, head_num):
    """One (Bt, S, F) batch block per grid step.  Block shapes:
         q/k/v/o : (Bt, S, F)  f32
         wq/wk/wv: (F, F)      bf16, PyTorch [out, in] layout
         wo_t    : (F, F)      bf16, [in, out] = W_o^T (transposed once on host)
         bq/bk/bv: (H, D)      f32 (head-major bias rows)
         bo      : (1, F)      f32
    """
    Bt, S, F = q_ref.shape
    D = F // head_num
    M = Bt * S
    scale = 1.0 / math.sqrt(D)
    # Contract both operands on their last dim: x[m, k] . w[n, k] == x @ w.T
    # (the MXU consumes a transposed RHS natively -- no in-kernel transpose).
    dn_nt = (((1,), (1,)), ((), ()))

    # Flatten tokens once so every projection matmul has M = Bt*S rows, and
    # feed the MXU bf16 operands (f32 accumulation).
    xq = q_ref[...].reshape(M, F).astype(jnp.bfloat16)
    xk = k_ref[...].reshape(M, F).astype(jnp.bfloat16)
    xv = v_ref[...].reshape(M, F).astype(jnp.bfloat16)

    def head_proj(x, w_ref, b_ref, h):
        # Weight-row slice (sublane slice, cheap) -> head-shaped projection
        # directly; avoids sub-128 lane slices of the projected activations.
        lo = h * D
        w = w_ref[lo:lo + D, :]                    # (D, F) bf16
        b = b_ref[h:h + 1, :]                      # (1, D) f32
        y = jax.lax.dot_general(x, w, dimension_numbers=dn_nt,
                                preferred_element_type=jnp.float32)
        return jnp.maximum(y + b, 0.0)             # (M, D) f32

    heads = []
    for h in range(head_num):   # static unroll; head_num is small
        # TODO(synk): for large head_num, restructure to bound live ranges
        # (vreg pressure) instead of a full static unroll.
        qh = head_proj(xq, wq_ref, bq_ref, h) * scale   # fold 1/sqrt(D) into Q
        kh = head_proj(xk, wk_ref, bk_ref, h)
        vh = head_proj(xv, wv_ref, bv_ref, h)

        qh = qh.reshape(Bt, S, D).astype(jnp.bfloat16)
        kh = kh.reshape(Bt, S, D).astype(jnp.bfloat16)
        vh = vh.reshape(Bt, S, D).astype(jnp.bfloat16)

        # Batched (over Bt) scaled-dot-product attention, bf16 MXU operands.
        s = jnp.einsum('bqd,bkd->bqk', qh, kh,
                       preferred_element_type=jnp.float32)      # (Bt, S, S)
        # TODO(synk): optional attention mask (this is the mask=None path).
        s = s - jnp.max(s, axis=-1, keepdims=True)
        p = jnp.exp(s)
        p = p * pl.reciprocal(jnp.sum(p, axis=-1, keepdims=True), approx=True)
        yh = jnp.einsum('bqk,bkd->bqd', p.astype(jnp.bfloat16), vh,
                        preferred_element_type=jnp.float32)     # (Bt, S, D)
        heads.append(yh)

    # Merge heads on the lane axis, then ONE full-K (K = F) output projection
    # instead of head_num serial K=D matmuls.
    y = jnp.concatenate(heads, axis=-1).reshape(M, F).astype(jnp.bfloat16)
    out = jnp.dot(y, wo_t_ref[...], preferred_element_type=jnp.float32)
    out = jnp.maximum(out + bo_ref[...], 0.0)
    # Bt > 1 per step packs more rows per store (helps lane-underfilled F<128
    # stores on v5e's single vector-store slot).
    o_ref[...] = out.reshape(Bt, S, F).astype(o_ref.dtype)
    # TODO(synk): for shapes where the (F, F) weights or (S, S) score tiles no
    # longer fit VMEM (threshold is ~half the sequence length on v7x's 64 MiB
    # vs v5e/v6e's 128 MiB), switch to tiled projections plus a flash-style
    # KV-tiled attention loop.


# ------------------------------ helpers --------------------------------------

def _const_spec(shape):
    """BlockSpec for a grid-invariant operand; single-buffered if supported."""
    index_map = lambda b: (0,) * len(shape)
    if hasattr(pl, "Buffered"):
        try:
            return pl.BlockSpec(shape, index_map, pipeline_mode=pl.Buffered(1))
        except TypeError:
            pass
    return pl.BlockSpec(shape, index_map)


def _device_vmem_cap():
    """~75% of physical VMEM: ~96 MiB on 128 MiB parts, ~48 MiB on v7x."""
    try:
        cap = int(pltpu.get_tpu_info().vmem_capacity_bytes)
    except Exception:
        cap = 64 << 20   # conservative fallback = v7x physical size
    return (cap * 3) // 4


def _working_set_bytes(Bt, S, F, D, H):
    """Per-grid-step VMEM estimate: pipelined blocks + live intermediates."""
    bf16, f32 = 2, 4
    M = Bt * S
    act_blocks = 4 * Bt * S * F * f32 * 2          # q/k/v/out blocks, 2-deep
    weight_blocks = 4 * F * F * bf16               # single-buffered bf16 weights
    bias_blocks = (3 * H * D + F) * f32
    live = (3 * M * F * bf16                       # bf16 token copies
            + 6 * M * D * (f32 + bf16)             # per-head q/k/v (f32 + bf16)
            + 2 * Bt * S * S * f32                 # scores + probs
            + H * M * D * f32                      # all heads' yh until concat
            + M * F * (f32 + bf16)                 # merged heads
            + M * F * f32)                         # output-projection result
    return act_blocks + weight_blocks + bias_blocks + live


def _pick_batch_block(B, S, F, D, H, vmem_cap):
    """Largest batch block that fits; keep >= 2 grid steps when possible so
    both v7x TensorCores get work from the 'parallel' batch axis."""
    if B <= 1:
        return 1
    divisors = [d for d in range(B, 0, -1) if B % d == 0]
    preferred = [d for d in divisors if B // d >= 2] or [1]
    for d in preferred:
        if _working_set_bytes(d, S, F, D, H) <= vmem_cap // 2:
            return d
    return 1


# ------------------------------ model wrapper --------------------------------

def prepare_mha_params(params, head_num):
    """One-time host-side preprocessing (hoisted out of the per-call path):
    bf16 weight storage, W_o transpose to [in, out], head-major bias rows."""
    F = params["wq"].shape[0]
    assert F % head_num == 0
    D = F // head_num
    return dict(
        wq=params["wq"].astype(jnp.bfloat16),
        wk=params["wk"].astype(jnp.bfloat16),
        wv=params["wv"].astype(jnp.bfloat16),
        wo_t=params["wo"].T.astype(jnp.bfloat16),
        bq=params["bq"].reshape(head_num, D),
        bk=params["bk"].reshape(head_num, D),
        bv=params["bv"].reshape(head_num, D),
        bo=params["bo"].reshape(1, F),
    )


def multi_head_attention(q, k, v, prepared, head_num, batch_block=None):
    """q, k, v: (B, S, F) -> (B, S, F). Matches MultiHeadAttention.forward
    with mask=None and activation=relu. `prepared` = prepare_mha_params(...)."""
    B, S, F = q.shape
    assert F % head_num == 0
    D = F // head_num

    vmem_cap = _device_vmem_cap()
    if batch_block is None:
        batch_block = _pick_batch_block(B, S, F, D, head_num, vmem_cap)
    assert B % batch_block == 0
    Bt = batch_block

    act_spec = pl.BlockSpec((Bt, S, F), lambda b: (b, 0, 0))
    w_spec = _const_spec((F, F))
    bqkv_spec = _const_spec((head_num, D))
    bo_spec = _const_spec((1, F))

    est = _working_set_bytes(Bt, S, F, D, head_num)
    vmem_limit = max(16 << 20, min(2 * est, vmem_cap))

    return pl.pallas_call(
        functools.partial(_mha_fused_kernel, head_num=head_num),
        out_shape=jax.ShapeDtypeStruct((B, S, F), q.dtype),
        grid=(B // Bt,),
        in_specs=[act_spec, act_spec, act_spec,
                  w_spec, w_spec, w_spec, w_spec,
                  bqkv_spec, bqkv_spec, bqkv_spec, bo_spec],
        out_specs=act_spec,
        compiler_params=pltpu.CompilerParams(
            dimension_semantics=("parallel",),
            vmem_limit_bytes=vmem_limit),
    )(q, k, v,
      prepared["wq"], prepared["wk"], prepared["wv"], prepared["wo_t"],
      prepared["bq"], prepared["bk"], prepared["bv"], prepared["bo"])


def init_mha_params(key, in_features):
    """Deterministic init matching nn.Linear's U(-1/sqrt(fan_in), 1/sqrt(fan_in))."""
    bound = 1.0 / math.sqrt(in_features)
    ks = jax.random.split(key, 8)

    def lin(kw, kb):
        w = jax.random.uniform(kw, (in_features, in_features),
                               jnp.float32, -bound, bound)
        b = jax.random.uniform(kb, (in_features,), jnp.float32, -bound, bound)
        return w, b

    wq, bq = lin(ks[0], ks[1])
    wk, bk = lin(ks[2], ks[3])
    wv, bv = lin(ks[4], ks[5])
    wo, bo = lin(ks[6], ks[7])
    return dict(wq=wq, bq=bq, wk=wk, bk=bk, wv=wv, bv=bv, wo=wo, bo=bo)


# --------------------------------- driver ------------------------------------

if __name__ == "__main__":
    B, S, F, H = 4, 8, 32, 4     # batch, seq, in_features, head_num

    root = jax.random.PRNGKey(0)
    kp_, kq_, kk_, kv_ = jax.random.split(root, 4)

    params = init_mha_params(kp_, F)
    prepared = prepare_mha_params(params, H)      # one-time host prep (hoisted)
    q = jax.random.normal(kq_, (B, S, F), jnp.float32)
    k = jax.random.normal(kk_, (B, S, F), jnp.float32)
    v = jax.random.normal(kv_, (B, S, F), jnp.float32)

    fwd = jax.jit(functools.partial(multi_head_attention, head_num=H))
    out = fwd(q, k, v, prepared)
    out = jax.block_until_ready(out)

    # Pure-JAX f32 reference (same math as the PyTorch module, mask=None).
    def ref(q, k, v):
        relu = lambda x: jnp.maximum(x, 0.0)
        qp = relu(q @ params["wq"].T + params["bq"])
        kp = relu(k @ params["wk"].T + params["bk"])
        vp = relu(v @ params["wv"].T + params["bv"])
        D = F // H
        tb = lambda x: (x.reshape(B, S, H, D).transpose(0, 2, 1, 3)
                        .reshape(B * H, S, D))
        qh, kh, vh = tb(qp), tb(kp), tb(vp)
        sc = (qh @ jnp.swapaxes(kh, -2, -1)) / math.sqrt(D)
        att = jax.nn.softmax(sc, axis=-1)
        yh = att @ vh
        y = yh.reshape(B, H, S, D).transpose(0, 2, 1, 3).reshape(B, S, F)
        return relu(y @ params["wo"].T + params["bo"])

    expected = ref(q, k, v)
    assert out.shape == (B, S, F)
    # Tolerance covers bf16 MXU operands + pl.reciprocal(approx=True) softmax.
    assert jnp.allclose(out, expected, atol=5e-2, rtol=5e-2), (
        float(jnp.max(jnp.abs(out - expected))))
    print("KERNEL_OK")
</pallas_src>

<mosaic_0001>
module attributes {stable_mosaic.version = 11 : i64} {
  func.func @_mha_fused_kernel(%arg0: i32, %arg1: memref<2x8x32xf32, #tpu.memory_space<vmem>>, %arg2: memref<2x8x32xf32, #tpu.memory_space<vmem>>, %arg3: memref<2x8x32xf32, #tpu.memory_space<vmem>>, %arg4: memref<32x32xbf16, #tpu.memory_space<vmem>>, %arg5: memref<32x32xbf16, #tpu.memory_space<vmem>>, %arg6: memref<32x32xbf16, #tpu.memory_space<vmem>>, %arg7: memref<32x32xbf16, #tpu.memory_space<vmem>>, %arg8: memref<4x8xf32, #tpu.memory_space<vmem>>, %arg9: memref<4x8xf32, #tpu.memory_space<vmem>>, %arg10: memref<4x8xf32, #tpu.memory_space<vmem>>, %arg11: memref<1x32xf32, #tpu.memory_space<vmem>>, %arg12: memref<2x8x32xf32, #tpu.memory_space<vmem>>) attributes {dimension_semantics = [#tpu.dimension_semantics<parallel>], iteration_bounds = array<i64: 2>, scalar_prefetch = 0 : i64, scratch_operands = 0 : i64, tpu.core_type = #tpu.core_type<tc>, window_params = [{transform_indices = @transform_0, window_bounds = array<i64: 2, 8, 32>}, {transform_indices = @transform_1, window_bounds = array<i64: 2, 8, 32>}, {transform_indices = @transform_2, window_bounds = array<i64: 2, 8, 32>}, {pipeline_mode = #tpu.pipeline_mode<synchronous>, transform_indices = @transform_3, window_bounds = array<i64: 32, 32>}, {pipeline_mode = #tpu.pipeline_mode<synchronous>, transform_indices = @transform_4, window_bounds = array<i64: 32, 32>}, {pipeline_mode = #tpu.pipeline_mode<synchronous>, transform_indices = @transform_5, window_bounds = array<i64: 32, 32>}, {pipeline_mode = #tpu.pipeline_mode<synchronous>, transform_indices = @transform_6, window_bounds = array<i64: 32, 32>}, {pipeline_mode = #tpu.pipeline_mode<synchronous>, transform_indices = @transform_7, window_bounds = array<i64: 4, 8>}, {pipeline_mode = #tpu.pipeline_mode<synchronous>, transform_indices = @transform_8, window_bounds = array<i64: 4, 8>}, {pipeline_mode = #tpu.pipeline_mode<synchronous>, transform_indices = @transform_9, window_bounds = array<i64: 4, 8>}, {pipeline_mode = #tpu.pipeline_mode<synchronous>, transform_indices = @transform_10, window_bounds = array<i64: 1, 32>}, {transform_indices = @transform_11, window_bounds = array<i64: 2, 8, 32>}]} {
    %c0 = arith.constant 0 : index
    %c0_0 = arith.constant 0 : index
    %c0_1 = arith.constant 0 : index
    %0 = vector.load %arg1[%c0, %c0_0, %c0_1] : memref<2x8x32xf32, #tpu.memory_space<vmem>>, vector<2x8x32xf32>
    %1 = vector.shape_cast %0 : vector<2x8x32xf32> to vector<16x32xf32>
    %2 = arith.truncf %1 : vector<16x32xf32> to vector<16x32xbf16>
    %c0_2 = arith.constant 0 : index
    %c0_3 = arith.constant 0 : index
    %c0_4 = arith.constant 0 : index
    %3 = vector.load %arg2[%c0_2, %c0_3, %c0_4] : memref<2x8x32xf32, #tpu.memory_space<vmem>>, vector<2x8x32xf32>
    %4 = vector.shape_cast %3 : vector<2x8x32xf32> to vector<16x32xf32>
    %5 = arith.truncf %4 : vector<16x32xf32> to vector<16x32xbf16>
    %c0_5 = arith.constant 0 : index
    %c0_6 = arith.constant 0 : index
    %c0_7 = arith.constant 0 : index
    %6 = vector.load %arg3[%c0_5, %c0_6, %c0_7] : memref<2x8x32xf32, #tpu.memory_space<vmem>>, vector<2x8x32xf32>
    %7 = vector.shape_cast %6 : vector<2x8x32xf32> to vector<16x32xf32>
    %8 = arith.truncf %7 : vector<16x32xf32> to vector<16x32xbf16>
    %c0_8 = arith.constant 0 : index
    %c0_9 = arith.constant 0 : index
    %9 = vector.load %arg4[%c0_8, %c0_9] : memref<32x32xbf16, #tpu.memory_space<vmem>>, vector<8x32xbf16>
    %c0_10 = arith.constant 0 : index
    %c0_11 = arith.constant 0 : index
    %10 = vector.load %arg8[%c0_10, %c0_11] : memref<4x8xf32, #tpu.memory_space<vmem>>, vector<1x8xf32>
    %cst = arith.constant dense<0.000000e+00> : vector<16x8xf32>
    %11 = tpu.matmul %2, %9, %cst {dimension_numbers = #tpu.dot_dimension_numbers<[1], [1], [0], [0], [0, 0, 1, 0], [], []>} : vector<16x32xbf16>, vector<8x32xbf16>, vector<16x8xf32> -> vector<16x8xf32>
    %12 = vector.broadcast %10 : vector<1x8xf32> to vector<16x8xf32>
    %13 = arith.addf %11, %12 : vector<16x8xf32>
    %cst_12 = arith.constant 0.000000e+00 : f32
    %14 = vector.broadcast %cst_12 : f32 to vector<16x8xf32>
    %15 = arith.maximumf %13, %14 : vector<16x8xf32>
    %cst_13 = arith.constant 0.353553385 : f32
    %16 = vector.broadcast %cst_13 : f32 to vector<16x8xf32>
    %17 = arith.mulf %15, %16 : vector<16x8xf32>
    %c0_14 = arith.constant 0 : index
    %c0_15 = arith.constant 0 : index
    %18 = vector.load %arg5[%c0_14, %c0_15] : memref<32x32xbf16, #tpu.memory_space<vmem>>, vector<8x32xbf16>
    %c0_16 = arith.constant 0 : index
    %c0_17 = arith.constant 0 : index
    %19 = vector.load %arg9[%c0_16, %c0_17] : memref<4x8xf32, #tpu.memory_space<vmem>>, vector<1x8xf32>
    %cst_18 = arith.constant dense<0.000000e+00> : vector<16x8xf32>
    %20 = tpu.matmul %5, %18, %cst_18 {dimension_numbers = #tpu.dot_dimension_numbers<[1], [1], [0], [0], [0, 0, 1, 0], [], []>} : vector<16x32xbf16>, vector<8x32xbf16>, vector<16x8xf32> -> vector<16x8xf32>
    %21 = vector.broadcast %19 : vector<1x8xf32> to vector<16x8xf32>
    %22 = arith.addf %20, %21 : vector<16x8xf32>
    %cst_19 = arith.constant 0.000000e+00 : f32
    %23 = vector.broadcast %cst_19 : f32 to vector<16x8xf32>
    %24 = arith.maximumf %22, %23 : vector<16x8xf32>
    %c0_20 = arith.constant 0 : index
    %c0_21 = arith.constant 0 : index
    %25 = vector.load %arg6[%c0_20, %c0_21] : memref<32x32xbf16, #tpu.memory_space<vmem>>, vector<8x32xbf16>
    %c0_22 = arith.constant 0 : index
    %c0_23 = arith.constant 0 : index
    %26 = vector.load %arg10[%c0_22, %c0_23] : memref<4x8xf32, #tpu.memory_space<vmem>>, vector<1x8xf32>
    %cst_24 = arith.constant dense<0.000000e+00> : vector<16x8xf32>
    %27 = tpu.matmul %8, %25, %cst_24 {dimension_numbers = #tpu.dot_dimension_numbers<[1], [1], [0], [0], [0, 0, 1, 0], [], []>} : vector<16x32xbf16>, vector<8x32xbf16>, vector<16x8xf32> -> vector<16x8xf32>
    %28 = vector.broadcast %26 : vector<1x8xf32> to vector<16x8xf32>
    %29 = arith.addf %27, %28 : vector<16x8xf32>
    %cst_25 = arith.constant 0.000000e+00 : f32
    %30 = vector.broadcast %cst_25 : f32 to vector<16x8xf32>
    %31 = arith.maximumf %29, %30 : vector<16x8xf32>
    %32 = vector.shape_cast %17 : vector<16x8xf32> to vector<2x8x8xf32>
    %33 = arith.truncf %32 : vector<2x8x8xf32> to vector<2x8x8xbf16>
    %34 = vector.shape_cast %24 : vector<16x8xf32> to vector<2x8x8xf32>
    %35 = arith.truncf %34 : vector<2x8x8xf32> to vector<2x8x8xbf16>
    %36 = vector.shape_cast %31 : vector<16x8xf32> to vector<2x8x8xf32>
    %37 = arith.truncf %36 : vector<2x8x8xf32> to vector<2x8x8xbf16>
    "tpu.trace_start"() <{level = 10 : i32, message = "bqd,bkd->bqk"}> : () -> ()
    %cst_26 = arith.constant dense<0.000000e+00> : vector<2x8x8xf32>
    %38 = tpu.matmul %33, %35, %cst_26 {dimension_numbers = #tpu.dot_dimension_numbers<[2], [2], [1], [1], [0, 0, 0, 1, 1, 1], [0], [0]>} : vector<2x8x8xbf16>, vector<2x8x8xbf16>, vector<2x8x8xf32> -> vector<2x8x8xf32>
    "tpu.trace_stop"() : () -> ()
    %cst_27 = arith.constant dense<0xFF800000> : vector<2x8xf32>
    %39 = vector.multi_reduction <maximumf>, %38, %cst_27 [2] : vector<2x8x8xf32> to vector<2x8xf32>
    %40 = vector.shape_cast %39 : vector<2x8xf32> to vector<2x8x1xf32>
    %41 = vector.broadcast %40 : vector<2x8x1xf32> to vector<2x8x8xf32>
    %42 = arith.subf %38, %41 : vector<2x8x8xf32>
    %43 = math.exp %42 : vector<2x8x8xf32>
    %cst_28 = arith.constant dense<0.000000e+00> : vector<2x8xf32>
    %44 = vector.multi_reduction <add>, %43, %cst_28 [2] : vector<2x8x8xf32> to vector<2x8xf32>
    %45 = vector.shape_cast %44 : vector<2x8xf32> to vector<2x8x1xf32>
    %46 = tpu.reciprocal %45 {approx = true} : vector<2x8x1xf32> -> vector<2x8x1xf32>
    %47 = vector.broadcast %46 : vector<2x8x1xf32> to vector<2x8x8xf32>
    %48 = arith.mulf %43, %47 : vector<2x8x8xf32>
    %49 = arith.truncf %48 : vector<2x8x8xf32> to vector<2x8x8xbf16>
    "tpu.trace_start"() <{level = 10 : i32, message = "bqk,bkd->bqd"}> : () -> ()
    %cst_29 = arith.constant dense<0.000000e+00> : vector<2x8x8xf32>
    %50 = tpu.matmul %49, %37, %cst_29 {dimension_numbers = #tpu.dot_dimension_numbers<[2], [1], [1], [2], [0, 0, 0, 1, 1, 2], [0], [0]>} : vector<2x8x8xbf16>, vector<2x8x8xbf16>, vector<2x8x8xf32> -> vector<2x8x8xf32>
    "tpu.trace_stop"() : () -> ()
    %c8 = arith.constant 8 : index
    %c0_30 = arith.constant 0 : index
    %51 = vector.load %arg4[%c8, %c0_30] : memref<32x32xbf16, #tpu.memory_space<vmem>>, vector<8x32xbf16>
    %c1 = arith.constant 1 : index
    %c0_31 = arith.constant 0 : index
    %52 = vector.load %arg8[%c1, %c0_31] : memref<4x8xf32, #tpu.memory_space<vmem>>, vector<1x8xf32>
    %cst_32 = arith.constant dense<0.000000e+00> : vector<16x8xf32>
    %53 = tpu.matmul %2, %51, %cst_32 {dimension_numbers = #tpu.dot_dimension_numbers<[1], [1], [0], [0], [0, 0, 1, 0], [], []>} : vector<16x32xbf16>, vector<8x32xbf16>, vector<16x8xf32> -> vector<16x8xf32>
    %54 = vector.broadcast %52 : vector<1x8xf32> to vector<16x8xf32>
    %55 = arith.addf %53, %54 : vector<16x8xf32>
    %cst_33 = arith.constant 0.000000e+00 : f32
    %56 = vector.broadcast %cst_33 : f32 to vector<16x8xf32>
    %57 = arith.maximumf %55, %56 : vector<16x8xf32>
    %cst_34 = arith.constant 0.353553385 : f32
    %58 = vector.broadcast %cst_34 : f32 to vector<16x8xf32>
    %59 = arith.mulf %57, %58 : vector<16x8xf32>
    %c8_35 = arith.constant 8 : index
    %c0_36 = arith.constant 0 : index
    %60 = vector.load %arg5[%c8_35, %c0_36] : memref<32x32xbf16, #tpu.memory_space<vmem>>, vector<8x32xbf16>
    %c1_37 = arith.constant 1 : index
    %c0_38 = arith.constant 0 : index
    %61 = vector.load %arg9[%c1_37, %c0_38] : memref<4x8xf32, #tpu.memory_space<vmem>>, vector<1x8xf32>
    %cst_39 = arith.constant dense<0.000000e+00> : vector<16x8xf32>
    %62 = tpu.matmul %5, %60, %cst_39 {dimension_numbers = #tpu.dot_dimension_numbers<[1], [1], [0], [0], [0, 0, 1, 0], [], []>} : vector<16x32xbf16>, vector<8x32xbf16>, vector<16x8xf32> -> vector<16x8xf32>
    %63 = vector.broadcast %61 : vector<1x8xf32> to vector<16x8xf32>
    %64 = arith.addf %62, %63 : vector<16x8xf32>
    %cst_40 = arith.constant 0.000000e+00 : f32
    %65 = vector.broadcast %cst_40 : f32 to vector<16x8xf32>
    %66 = arith.maximumf %64, %65 : vector<16x8xf32>
    %c8_41 = arith.constant 8 : index
    %c0_42 = arith.constant 0 : index
    %67 = vector.load %arg6[%c8_41, %c0_42] : memref<32x32xbf16, #tpu.memory_space<vmem>>, vector<8x32xbf16>
    %c1_43 = arith.constant 1 : index
    %c0_44 = arith.constant 0 : index
    %68 = vector.load %arg10[%c1_43, %c0_44] : memref<4x8xf32, #tpu.memory_space<vmem>>, vector<1x8xf32>
    %cst_45 = arith.constant dense<0.000000e+00> : vector<16x8xf32>
    %69 = tpu.matmul %8, %67, %cst_45 {dimension_numbers = #tpu.dot_dimension_numbers<[1], [1], [0], [0], [0, 0, 1, 0], [], []>} : vector<16x32xbf16>, vector<8x32xbf16>, vector<16x8xf32> -> vector<16x8xf32>
    %70 = vector.broadcast %68 : vector<1x8xf32> to vector<16x8xf32>
    %71 = arith.addf %69, %70 : vector<16x8xf32>
    %cst_46 = arith.constant 0.000000e+00 : f32
    %72 = vector.broadcast %cst_46 : f32 to vector<16x8xf32>
    %73 = arith.maximumf %71, %72 : vector<16x8xf32>
    %74 = vector.shape_cast %59 : vector<16x8xf32> to vector<2x8x8xf32>
    %75 = arith.truncf %74 : vector<2x8x8xf32> to vector<2x8x8xbf16>
    %76 = vector.shape_cast %66 : vector<16x8xf32> to vector<2x8x8xf32>
    %77 = arith.truncf %76 : vector<2x8x8xf32> to vector<2x8x8xbf16>
    %78 = vector.shape_cast %73 : vector<16x8xf32> to vector<2x8x8xf32>
    %79 = arith.truncf %78 : vector<2x8x8xf32> to vector<2x8x8xbf16>
    "tpu.trace_start"() <{level = 10 : i32, message = "bqd,bkd->bqk"}> : () -> ()
    %cst_47 = arith.constant dense<0.000000e+00> : vector<2x8x8xf32>
    %80 = tpu.matmul %75, %77, %cst_47 {dimension_numbers = #tpu.dot_dimension_numbers<[2], [2], [1], [1], [0, 0, 0, 1, 1, 1], [0], [0]>} : vector<2x8x8xbf16>, vector<2x8x8xbf16>, vector<2x8x8xf32> -> vector<2x8x8xf32>
    "tpu.trace_stop"() : () -> ()
    %cst_48 = arith.constant dense<0xFF800000> : vector<2x8xf32>
    %81 = vector.multi_reduction <maximumf>, %80, %cst_48 [2] : vector<2x8x8xf32> to vector<2x8xf32>
    %82 = vector.shape_cast %81 : vector<2x8xf32> to vector<2x8x1xf32>
    %83 = vector.broadcast %82 : vector<2x8x1xf32> to vector<2x8x8xf32>
    %84 = arith.subf %80, %83 : vector<2x8x8xf32>
    %85 = math.exp %84 : vector<2x8x8xf32>
    %cst_49 = arith.constant dense<0.000000e+00> : vector<2x8xf32>
    %86 = vector.multi_reduction <add>, %85, %cst_49 [2] : vector<2x8x8xf32> to vector<2x8xf32>
    %87 = vector.shape_cast %86 : vector<2x8xf32> to vector<2x8x1xf32>
    %88 = tpu.reciprocal %87 {approx = true} : vector<2x8x1xf32> -> vector<2x8x1xf32>
    %89 = vector.broadcast %88 : vector<2x8x1xf32> to vector<2x8x8xf32>
    %90 = arith.mulf %85, %89 : vector<2x8x8xf32>
    %91 = arith.truncf %90 : vector<2x8x8xf32> to vector<2x8x8xbf16>
    "tpu.trace_start"() <{level = 10 : i32, message = "bqk,bkd->bqd"}> : () -> ()
    %cst_50 = arith.constant dense<0.000000e+00> : vector<2x8x8xf32>
    %92 = tpu.matmul %91, %79, %cst_50 {dimension_numbers = #tpu.dot_dimension_numbers<[2], [1], [1], [2], [0, 0, 0, 1, 1, 2], [0], [0]>} : vector<2x8x8xbf16>, vector<2x8x8xbf16>, vector<2x8x8xf32> -> vector<2x8x8xf32>
    "tpu.trace_stop"() : () -> ()
    %c16 = arith.constant 16 : index
    %c0_51 = arith.constant 0 : index
    %93 = vector.load %arg4[%c16, %c0_51] : memref<32x32xbf16, #tpu.memory_space<vmem>>, vector<8x32xbf16>
    %c2 = arith.constant 2 : index
    %c0_52 = arith.constant 0 : index
    %94 = vector.load %arg8[%c2, %c0_52] : memref<4x8xf32, #tpu.memory_space<vmem>>, vector<1x8xf32>
    %cst_53 = arith.constant dense<0.000000e+00> : vector<16x8xf32>
    %95 = tpu.matmul %2, %93, %cst_53 {dimension_numbers = #tpu.dot_dimension_numbers<[1], [1], [0], [0], [0, 0, 1, 0], [], []>} : vector<16x32xbf16>, vector<8x32xbf16>, vector<16x8xf32> -> vector<16x8xf32>
    %96 = vector.broadcast %94 : vector<1x8xf32> to vector<16x8xf32>
    %97 = arith.addf %95, %96 : vector<16x8xf32>
    %cst_54 = arith.constant 0.000000e+00 : f32
    %98 = vector.broadcast %cst_54 : f32 to vector<16x8xf32>
    %99 = arith.maximumf %97, %98 : vector<16x8xf32>
    %cst_55 = arith.constant 0.353553385 : f32
    %100 = vector.broadcast %cst_55 : f32 to vector<16x8xf32>
    %101 = arith.mulf %99, %100 : vector<16x8xf32>
    %c16_56 = arith.constant 16 : index
    %c0_57 = arith.constant 0 : index
    %102 = vector.load %arg5[%c16_56, %c0_57] : memref<32x32xbf16, #tpu.memory_space<vmem>>, vector<8x32xbf16>
    %c2_58 = arith.constant 2 : index
    %c0_59 = arith.constant 0 : index
    %103 = vector.load %arg9[%c2_58, %c0_59] : memref<4x8xf32, #tpu.memory_space<vmem>>, vector<1x8xf32>
    %cst_60 = arith.constant dense<0.000000e+00> : vector<16x8xf32>
    %104 = tpu.matmul %5, %102, %cst_60 {dimension_numbers = #tpu.dot_dimension_numbers<[1], [1], [0], [0], [0, 0, 1, 0], [], []>} : vector<16x32xbf16>, vector<8x32xbf16>, vector<16x8xf32> -> vector<16x8xf32>
    %105 = vector.broadcast %103 : vector<1x8xf32> to vector<16x8xf32>
    %106 = arith.addf %104, %105 : vector<16x8xf32>
    %cst_61 = arith.constant 0.000000e+00 : f32
    %107 = vector.broadcast %cst_61 : f32 to vector<16x8xf32>
    %108 = arith.maximumf %106, %107 : vector<16x8xf32>
    %c16_62 = arith.constant 16 : index
    %c0_63 = arith.constant 0 : index
    %109 = vector.load %arg6[%c16_62, %c0_63] : memref<32x32xbf16, #tpu.memory_space<vmem>>, vector<8x32xbf16>
    %c2_64 = arith.constant 2 : index
    %c0_65 = arith.constant 0 : index
    %110 = vector.load %arg10[%c2_64, %c0_65] : memref<4x8xf32, #tpu.memory_space<vmem>>, vector<1x8xf32>
    %cst_66 = arith.constant dense<0.000000e+00> : vector<16x8xf32>
    %111 = tpu.matmul %8, %109, %cst_66 {dimension_numbers = #tpu.dot_dimension_numbers<[1], [1], [0], [0], [0, 0, 1, 0], [], []>} : vector<16x32xbf16>, vector<8x32xbf16>, vector<16x8xf32> -> vector<16x8xf32>
    %112 = vector.broadcast %110 : vector<1x8xf32> to vector<16x8xf32>
    %113 = arith.addf %111, %112 : vector<16x8xf32>
    %cst_67 = arith.constant 0.000000e+00 : f32
    %114 = vector.broadcast %cst_67 : f32 to vector<16x8xf32>
    %115 = arith.maximumf %113, %114 : vector<16x8xf32>
    %116 = vector.shape_cast %101 : vector<16x8xf32> to vector<2x8x8xf32>
    %117 = arith.truncf %116 : vector<2x8x8xf32> to vector<2x8x8xbf16>
    %118 = vector.shape_cast %108 : vector<16x8xf32> to vector<2x8x8xf32>
    %119 = arith.truncf %118 : vector<2x8x8xf32> to vector<2x8x8xbf16>
    %120 = vector.shape_cast %115 : vector<16x8xf32> to vector<2x8x8xf32>
    %121 = arith.truncf %120 : vector<2x8x8xf32> to vector<2x8x8xbf16>
    "tpu.trace_start"() <{level = 10 : i32, message = "bqd,bkd->bqk"}> : () -> ()
    %cst_68 = arith.constant dense<0.000000e+00> : vector<2x8x8xf32>
    %122 = tpu.matmul %117, %119, %cst_68 {dimension_numbers = #tpu.dot_dimension_numbers<[2], [2], [1], [1], [0, 0, 0, 1, 1, 1], [0], [0]>} : vector<2x8x8xbf16>, vector<2x8x8xbf16>, vector<2x8x8xf32> -> vector<2x8x8xf32>
    "tpu.trace_stop"() : () -> ()
    %cst_69 = arith.constant dense<0xFF800000> : vector<2x8xf32>
    %123 = vector.multi_reduction <maximumf>, %122, %cst_69 [2] : vector<2x8x8xf32> to vector<2x8xf32>
    %124 = vector.shape_cast %123 : vector<2x8xf32> to vector<2x8x1xf32>
    %125 = vector.broadcast %124 : vector<2x8x1xf32> to vector<2x8x8xf32>
    %126 = arith.subf %122, %125 : vector<2x8x8xf32>
    %127 = math.exp %126 : vector<2x8x8xf32>
    %cst_70 = arith.constant dense<0.000000e+00> : vector<2x8xf32>
    %128 = vector.multi_reduction <add>, %127, %cst_70 [2] : vector<2x8x8xf32> to vector<2x8xf32>
    %129 = vector.shape_cast %128 : vector<2x8xf32> to vector<2x8x1xf32>
    %130 = tpu.reciprocal %129 {approx = true} : vector<2x8x1xf32> -> vector<2x8x1xf32>
    %131 = vector.broadcast %130 : vector<2x8x1xf32> to vector<2x8x8xf32>
    %132 = arith.mulf %127, %131 : vector<2x8x8xf32>
    %133 = arith.truncf %132 : vector<2x8x8xf32> to vector<2x8x8xbf16>
    "tpu.trace_start"() <{level = 10 : i32, message = "bqk,bkd->bqd"}> : () -> ()
    %cst_71 = arith.constant dense<0.000000e+00> : vector<2x8x8xf32>
    %134 = tpu.matmul %133, %121, %cst_71 {dimension_numbers = #tpu.dot_dimension_numbers<[2], [1], [1], [2], [0, 0, 0, 1, 1, 2], [0], [0]>} : vector<2x8x8xbf16>, vector<2x8x8xbf16>, vector<2x8x8xf32> -> vector<2x8x8xf32>
    "tpu.trace_stop"() : () -> ()
    %c24 = arith.constant 24 : index
    %c0_72 = arith.constant 0 : index
    %135 = vector.load %arg4[%c24, %c0_72] : memref<32x32xbf16, #tpu.memory_space<vmem>>, vector<8x32xbf16>
    %c3 = arith.constant 3 : index
    %c0_73 = arith.constant 0 : index
    %136 = vector.load %arg8[%c3, %c0_73] : memref<4x8xf32, #tpu.memory_space<vmem>>, vector<1x8xf32>
    %cst_74 = arith.constant dense<0.000000e+00> : vector<16x8xf32>
    %137 = tpu.matmul %2, %135, %cst_74 {dimension_numbers = #tpu.dot_dimension_numbers<[1], [1], [0], [0], [0, 0, 1, 0], [], []>} : vector<16x32xbf16>, vector<8x32xbf16>, vector<16x8xf32> -> vector<16x8xf32>
    %138 = vector.broadcast %136 : vector<1x8xf32> to vector<16x8xf32>
    %139 = arith.addf %137, %138 : vector<16x8xf32>
    %cst_75 = arith.constant 0.000000e+00 : f32
    %140 = vector.broadcast %cst_75 : f32 to vector<16x8xf32>
    %141 = arith.maximumf %139, %140 : vector<16x8xf32>
    %cst_76 = arith.constant 0.353553385 : f32
    %142 = vector.broadcast %cst_76 : f32 to vector<16x8xf32>
    %143 = arith.mulf %141, %142 : vector<16x8xf32>
    %c24_77 = arith.constant 24 : index
    %c0_78 = arith.constant 0 : index
    %144 = vector.load %arg5[%c24_77, %c0_78] : memref<32x32xbf16, #tpu.memory_space<vmem>>, vector<8x32xbf16>
    %c3_79 = arith.constant 3 : index
    %c0_80 = arith.constant 0 : index
    %145 = vector.load %arg9[%c3_79, %c0_80] : memref<4x8xf32, #tpu.memory_space<vmem>>, vector<1x8xf32>
    %cst_81 = arith.constant dense<0.000000e+00> : vector<16x8xf32>
    %146 = tpu.matmul %5, %144, %cst_81 {dimension_numbers = #tpu.dot_dimension_numbers<[1], [1], [0], [0], [0, 0, 1, 0], [], []>} : vector<16x32xbf16>, vector<8x32xbf16>, vector<16x8xf32> -> vector<16x8xf32>
    %147 = vector.broadcast %145 : vector<1x8xf32> to vector<16x8xf32>
    %148 = arith.addf %146, %147 : vector<16x8xf32>
    %cst_82 = arith.constant 0.000000e+00 : f32
    %149 = vector.broadcast %cst_82 : f32 to vector<16x8xf32>
    %150 = arith.maximumf %148, %149 : vector<16x8xf32>
    %c24_83 = arith.constant 24 : index
    %c0_84 = arith.constant 0 : index
    %151 = vector.load %arg6[%c24_83, %c0_84] : memref<32x32xbf16, #tpu.memory_space<vmem>>, vector<8x32xbf16>
    %c3_85 = arith.constant 3 : index
    %c0_86 = arith.constant 0 : index
    %152 = vector.load %arg10[%c3_85, %c0_86] : memref<4x8xf32, #tpu.memory_space<vmem>>, vector<1x8xf32>
    %cst_87 = arith.constant dense<0.000000e+00> : vector<16x8xf32>
    %153 = tpu.matmul %8, %151, %cst_87 {dimension_numbers = #tpu.dot_dimension_numbers<[1], [1], [0], [0], [0, 0, 1, 0], [], []>} : vector<16x32xbf16>, vector<8x32xbf16>, vector<16x8xf32> -> vector<16x8xf32>
    %154 = vector.broadcast %152 : vector<1x8xf32> to vector<16x8xf32>
    %155 = arith.addf %153, %154 : vector<16x8xf32>
    %cst_88 = arith.constant 0.000000e+00 : f32
    %156 = vector.broadcast %cst_88 : f32 to vector<16x8xf32>
    %157 = arith.maximumf %155, %156 : vector<16x8xf32>
    %158 = vector.shape_cast %143 : vector<16x8xf32> to vector<2x8x8xf32>
    %159 = arith.truncf %158 : vector<2x8x8xf32> to vector<2x8x8xbf16>
    %160 = vector.shape_cast %150 : vector<16x8xf32> to vector<2x8x8xf32>
    %161 = arith.truncf %160 : vector<2x8x8xf32> to vector<2x8x8xbf16>
    %162 = vector.shape_cast %157 : vector<16x8xf32> to vector<2x8x8xf32>
    %163 = arith.truncf %162 : vector<2x8x8xf32> to vector<2x8x8xbf16>
    "tpu.trace_start"() <{level = 10 : i32, message = "bqd,bkd->bqk"}> : () -> ()
    %cst_89 = arith.constant dense<0.000000e+00> : vector<2x8x8xf32>
    %164 = tpu.matmul %159, %161, %cst_89 {dimension_numbers = #tpu.dot_dimension_numbers<[2], [2], [1], [1], [0, 0, 0, 1, 1, 1], [0], [0]>} : vector<2x8x8xbf16>, vector<2x8x8xbf16>, vector<2x8x8xf32> -> vector<2x8x8xf32>
    "tpu.trace_stop"() : () -> ()
    %cst_90 = arith.constant dense<0xFF800000> : vector<2x8xf32>
    %165 = vector.multi_reduction <maximumf>, %164, %cst_90 [2] : vector<2x8x8xf32> to vector<2x8xf32>
    %166 = vector.shape_cast %165 : vector<2x8xf32> to vector<2x8x1xf32>
    %167 = vector.broadcast %166 : vector<2x8x1xf32> to vector<2x8x8xf32>
    %168 = arith.subf %164, %167 : vector<2x8x8xf32>
    %169 = math.exp %168 : vector<2x8x8xf32>
    %cst_91 = arith.constant dense<0.000000e+00> : vector<2x8xf32>
    %170 = vector.multi_reduction <add>, %169, %cst_91 [2] : vector<2x8x8xf32> to vector<2x8xf32>
    %171 = vector.shape_cast %170 : vector<2x8xf32> to vector<2x8x1xf32>
    %172 = tpu.reciprocal %171 {approx = true} : vector<2x8x1xf32> -> vector<2x8x1xf32>
    %173 = vector.broadcast %172 : vector<2x8x1xf32> to vector<2x8x8xf32>
    %174 = arith.mulf %169, %173 : vector<2x8x8xf32>
    %175 = arith.truncf %174 : vector<2x8x8xf32> to vector<2x8x8xbf16>
    "tpu.trace_start"() <{level = 10 : i32, message = "bqk,bkd->bqd"}> : () -> ()
    %cst_92 = arith.constant dense<0.000000e+00> : vector<2x8x8xf32>
    %176 = tpu.matmul %175, %163, %cst_92 {dimension_numbers = #tpu.dot_dimension_numbers<[2], [1], [1], [2], [0, 0, 0, 1, 1, 2], [0], [0]>} : vector<2x8x8xbf16>, vector<2x8x8xbf16>, vector<2x8x8xf32> -> vector<2x8x8xf32>
    "tpu.trace_stop"() : () -> ()
    %177 = tpu.concatenate %50, %92, %134, %176 in 2 : vector<2x8x8xf32>, vector<2x8x8xf32>, vector<2x8x8xf32>, vector<2x8x8xf32> -> vector<2x8x32xf32>
    %178 = vector.shape_cast %177 : vector<2x8x32xf32> to vector<16x32xf32>
    %179 = arith.truncf %178 : vector<16x32xf32> to vector<16x32xbf16>
    %c0_93 = arith.constant 0 : index
    %c0_94 = arith.constant 0 : index
    %180 = vector.load %arg7[%c0_93, %c0_94] : memref<32x32xbf16, #tpu.memory_space<vmem>>, vector<32x32xbf16>
    %cst_95 = arith.constant dense<0.000000e+00> : vector<16x32xf32>
    %181 = tpu.matmul %179, %180, %cst_95 {dimension_numbers = #tpu.dot_dimension_numbers<[1], [0], [0], [1], [0, 0, 1, 1], [], []>} : vector<16x32xbf16>, vector<32x32xbf16>, vector<16x32xf32> -> vector<16x32xf32>
    %c0_96 = arith.constant 0 : index
    %c0_97 = arith.constant 0 : index
    %182 = vector.load %arg11[%c0_96, %c0_97] : memref<1x32xf32, #tpu.memory_space<vmem>>, vector<1x32xf32>
    %183 = vector.broadcast %182 : vector<1x32xf32> to vector<16x32xf32>
    %184 = arith.addf %181, %183 : vector<16x32xf32>
    %cst_98 = arith.constant 0.000000e+00 : f32
    %185 = vector.broadcast %cst_98 : f32 to vector<16x32xf32>
    %186 = arith.maximumf %184, %185 : vector<16x32xf32>
    %187 = vector.shape_cast %186 : vector<16x32xf32> to vector<2x8x32xf32>
    %c0_99 = arith.constant 0 : index
    %c0_100 = arith.constant 0 : index
    %c0_101 = arith.constant 0 : index
    %188 = vector.load %arg12[%c0_99, %c0_100, %c0_101] : memref<2x8x32xf32, #tpu.memory_space<vmem>>, vector<2x8x32xf32>
    tpu.vector_store %arg12[%c0_99, %c0_100, %c0_101], %187 {strides = array<i32>} : memref<2x8x32xf32, #tpu.memory_space<vmem>>, vector<2x8x32xf32>,
    return
  }
  func.func @transform_0(%arg0: i32) -> (i32, i32, i32) {
    %c0_i32 = arith.constant 0 : i32
    %c0_i32_0 = arith.constant 0 : i32
    %c0_i32_1 = arith.constant 0 : i32
    return %arg0, %c0_i32, %c0_i32_0 : i32, i32, i32
  }
  func.func @transform_1(%arg0: i32) -> (i32, i32, i32) {
    %c0_i32 = arith.constant 0 : i32
    %c0_i32_0 = arith.constant 0 : i32
    %c0_i32_1 = arith.constant 0 : i32
    return %arg0, %c0_i32, %c0_i32_0 : i32, i32, i32
  }
  func.func @transform_2(%arg0: i32) -> (i32, i32, i32) {
    %c0_i32 = arith.constant 0 : i32
    %c0_i32_0 = arith.constant 0 : i32
    %c0_i32_1 = arith.constant 0 : i32
    return %arg0, %c0_i32, %c0_i32_0 : i32, i32, i32
  }
  func.func @transform_3(%arg0: i32) -> (i32, i32) {
    %c0_i32 = arith.constant 0 : i32
    %c0_i32_0 = arith.constant 0 : i32
    %c0_i32_1 = arith.constant 0 : i32
    return %c0_i32, %c0_i32_0 : i32, i32
  }
  func.func @transform_4(%arg0: i32) -> (i32, i32) {
    %c0_i32 = arith.constant 0 : i32
    %c0_i32_0 = arith.constant 0 : i32
    %c0_i32_1 = arith.constant 0 : i32
    return %c0_i32, %c0_i32_0 : i32, i32
  }
  func.func @transform_5(%arg0: i32) -> (i32, i32) {
    %c0_i32 = arith.constant 0 : i32
    %c0_i32_0 = arith.constant 0 : i32
    %c0_i32_1 = arith.constant 0 : i32
    return %c0_i32, %c0_i32_0 : i32, i32
  }
  func.func @transform_6(%arg0: i32) -> (i32, i32) {
    %c0_i32 = arith.constant 0 : i32
    %c0_i32_0 = arith.constant 0 : i32
    %c0_i32_1 = arith.constant 0 : i32
    return %c0_i32, %c0_i32_0 : i32, i32
  }
  func.func @transform_7(%arg0: i32) -> (i32, i32) {
    %c0_i32 = arith.constant 0 : i32
    %c0_i32_0 = arith.constant 0 : i32
    %c0_i32_1 = arith.constant 0 : i32
    return %c0_i32, %c0_i32_0 : i32, i32
  }
  func.func @transform_8(%arg0: i32) -> (i32, i32) {
    %c0_i32 = arith.constant 0 : i32
    %c0_i32_0 = arith.constant 0 : i32
    %c0_i32_1 = arith.constant 0 : i32
    return %c0_i32, %c0_i32_0 : i32, i32
  }
  func.func @transform_9(%arg0: i32) -> (i32, i32) {
    %c0_i32 = arith.constant 0 : i32
    %c0_i32_0 = arith.constant 0 : i32
    %c0_i32_1 = arith.constant 0 : i32
    return %c0_i32, %c0_i32_0 : i32, i32
  }
  func.func @transform_10(%arg0: i32) -> (i32, i32) {
    %c0_i32 = arith.constant 0 : i32
    %c0_i32_0 = arith.constant 0 : i32
    %c0_i32_1 = arith.constant 0 : i32
    return %c0_i32, %c0_i32_0 : i32, i32
  }
  func.func @transform_11(%arg0: i32) -> (i32, i32, i32) {
    %c0_i32 = arith.constant 0 : i32
    %c0_i32_0 = arith.constant 0 : i32
    %c0_i32_1 = arith.constant 0 : i32
    return %arg0, %c0_i32, %c0_i32_0 : i32, i32, i32
  }
}

</mosaic_0001>

<bundles_post_ra>
// kernel: multi_head_attention.1
= control target key start
LH: loop header
LB: loop body
LE: loop exit
PB: predicated region body
PF: predicated region fallthrough
CT: control target
= control target key end

     0   :  { %s3865_s0 = inlined_call_operand.hbm [shape: f32[4,8,32], index: 0, kind: input, shape index: {}]   ;;  %s3866_s1 = inlined_call_operand.hbm [shape: f32[4,8,32], index: 1, kind: input, shape index: {}]   ;;  %s3867_s2 = inlined_call_operand.hbm [shape: f32[4,8,32], index: 2, kind: input, shape index: {}]   ;;  %s3868_s3 = inlined_call_operand.vmem [shape: bf16[32,32], index: 3, kind: input, shape index: {}]   ;;  %s3869_s4 = inlined_call_operand.hbm [shape: bf16[32,32], index: 4, kind: input, shape index: {}]   ;;  %s3870_s5 = inlined_call_operand.vmem [shape: bf16[32,32], index: 5, kind: input, shape index: {}]   ;;  %s3871_s6 = inlined_call_operand.hbm [shape: bf16[32,32], index: 6, kind: input, shape index: {}]   ;;  %s3872_s7 = inlined_call_operand.hbm [shape: f32[4,8], index: 7, kind: input, shape index: {}]   ;;  %s3873_s8 = inlined_call_operand.hbm [shape: f32[4,8], index: 8, kind: input, shape index: {}]   ;;  %s3874_s9 = inlined_call_operand.hbm [shape: f32[4,8], index: 9, kind: input, shape index: {}]   ;;  %s3875_s10 = inlined_call_operand.vmem [shape: f32[1,32], index: 10, kind: input, shape index: {}]   ;;  %s3876_s11 = inlined_call_operand.hbm [shape: f32[4,8,32], index: 11, kind: output, shape index: {}]  }
   0x1   :  { %3908 = sst [smem:[#allocation30_spill]] %s3866_s1 }
   0x2   :  { %3909 = sst [smem:[#allocation31_spill]] %s3868_s3 }
   0x3   :  { %3910 = sst [smem:[#allocation32_spill]] %s3869_s4 }
   0x4   :  { %3911 = sst [smem:[#allocation33_spill]] %s3870_s5 }
   0x5   :  { %3912 = sst [smem:[#allocation34_spill]] %s3872_s7 }
   0x6   :  { %3913 = sst [smem:[#allocation35_spill]] %s3875_s10 }
   0x7   :  { %3914 = sst [smem:[#allocation36_spill]] %s3876_s11 }
   0x8   :  { %16 = vsyncpa [#allocation3], 0 }
   0x9   :  { %18 = vsyncpa [#allocation3 + $0x1], 0 }
   0xa   :  { %19 = vsyncpa [#allocation6], 0 }
   0xb   :  { %21 = vsyncpa [#allocation6 + $0x1], 0 }
   0xc   :  { %22 = vsyncpa [#allocation9], 0 }
   0xd   :  { %23 = vsyncpa [#allocation12], 0 }
   0xe   :  { %24 = vsyncpa [#allocation15], 0 }
   0xf   :  { %25 = vsyncpa [#allocation4], 0 }
  0x10   :  { %27 = vsyncpa [#allocation4 + $0x1], 0  ;;  %s3219_s17 = smov 0   ;;  %s3221_s18 = smov 0  }
  0x11   :  { %s3223_s19 = smov 0   ;;  %s3225_s20 = smov 0  }
  0x12 LB: > { %3915 = sst [smem:[#allocation23_spill]] %s3126_s17  ;;  %s3140_s21 = smov [#allocation8]   ;;  %s3138_s20 = sphi %s3225_s20, %s3963_s20   ;;  %s3134_s19 = sphi %s3223_s19, %s3967_s19   ;;  %s3130_s18 = sphi %s3221_s18, %s3966_s18   ;;  %s3126_s17 = sphi %s3219_s17, %s3965_s17  }
  0x13   : > { %3916 = sst [smem:[#allocation24_spill]] %s3138_s20  ;;  %s325_s22 = sshll.u32 %s3140_s21, 4  ;;  %s3246_s22 = int_to_ptr.vmem [resolvable:$true] %s325_s22 }
  0x14   : > { %s3240_s23 = sadd.s32 4294967295, %s3138_s20   ;;  %p2346_p0 = scmp.ge.s32.totalorder %s3138_s20, 1 }
  0x15   : > { %3917 = sst [smem:[#allocation25_spill]] %s3240_s23  ;;  %p3877_p1 = scmp.eq.s32.totalorder %s3240_s23, 0 }
  0x16   : > { %p297_p2 = scmp.eq.s32.totalorder %s3240_s23, 1  ;;  %p310_p3 = scmp.lt.s32.totalorder %s3138_s20, 3 }
  0x17   : > { %s3141_s25 = smov [#allocation11]   ;;  %s3920_s4 = sld [smem:[#allocation32_spill]] }
  0x18   : > { %p3248_p4 = pnand %p2346_p0, %p310_p3  ;;  %s355_s26 = sshll.u32 %s3141_s25, 4  ;;  %s3255_s26 = int_to_ptr.vmem [resolvable:$true] %s355_s26 }
  0x1a   : > { %s3918_s24 = scalar_select %p3248_p4, 1, 0 }
  0x1b   : > { %p2688_p6 = pneg %p3248_p4 }
  0x1d   : > { %p3259_p7 = pnand %p2688_p6, %p3877_p1  ;;  %s2826_s30 = scalar_lea.hbm %s3920_s4, 256 }
  0x1e   : > { %p2827_p8 = scmp.ne.s32.totalorder %s3920_s4, %s2826_s30  ;;  %p2833_p12 = scmp.lt.u32.totalorder %s2826_s30, %s3920_s4 }
  0x1f   : > { %s3919_s27 = scalar_select %p3259_p7, 1, 0 }
  0x20   : > { %p3271_p9 = pneg %p3259_p7 }
  0x22   : > { %s3921_s14 = scalar_select %p3271_p9, 1, 0 }
  0x23   : > { %p2829_p10 = pnand %p3271_p9, %p2827_p8 }
  0x25   : > { %p2830_p11 = pneg %p2829_p10 }
  0x27   : > { %p2835_p13 = pnand %p2833_p12, %p2830_p11 }
  0x29   : > { %2838 = shalt.err (!%p2835_p13)
}
  0x2a   : > { %s2839_s21 = scalar_lea.vmem %s3246_s22, 256  ;;  %p2847_p5 = scmp.lt.s32.totalorder %s3246_s22, %s3246_s22 }
  0x2b   : > { %p2840_p0 = scmp.ne.s32.totalorder %s3246_s22, %s2839_s21  ;;  %p2848_p1 = scmp.lt.s32.totalorder %s2839_s21, %s2839_s21 }
  0x2d   : > { %p2842_p3 = pnand %p2840_p0, %p3271_p9  ;;  %p2849_p8 = por %p2848_p1, %p2847_p5 }
  0x2f   : > { %p2843_p6 = pneg %p2842_p3 }
  0x31   : > { %p2850_p10 = pnand %p2849_p8, %p2843_p6 }
  0x33   : > { %2853 = shalt.err (!%p2850_p10)
}
  0x34   : > { %s3880_s25 = smov 64   ;;  %s3881_s28 = smov 4  }
  0x35   : > { %2691 = dma.hbm_to_vmem [thread:$0]  (!%p3259_p7), %s3920_s4, 256, %s3246_s22, [#allocation9], %s3880_s25, %s3880_s25, %s3881_s28  }
  0x36   : > { %s3922_s7 = sld [smem:[#allocation34_spill]] }
  0x3c   : > { %s2854_s15 = scalar_lea.hbm %s3922_s7, 64 }
  0x3d   : > { %p2855_p1 = scmp.ne.s32.totalorder %s3922_s7, %s2854_s15  ;;  %p2861_p12 = scmp.lt.u32.totalorder %s2854_s15, %s3922_s7 }
  0x3f   : > { %p2857_p5 = pnand %p2855_p1, %p3271_p9 }
  0x41   : > { %p2858_p11 = pneg %p2857_p5 }
  0x43   : > { %p2863_p13 = pnand %p2861_p12, %p2858_p11 }
  0x45   : > { %2866 = shalt.err (!%p2863_p13)
}
  0x46   : > { %s2867_s22 = scalar_lea.vmem %s3255_s26, 64  ;;  %p2875_p8 = scmp.lt.s32.totalorder %s3255_s26, %s3255_s26 }
  0x47   : > { %p2868_p0 = scmp.ne.s32.totalorder %s3255_s26, %s2867_s22  ;;  %p2876_p10 = scmp.lt.s32.totalorder %s2867_s22, %s2867_s22 }
  0x49   : > { %p2870_p3 = pnand %p2868_p0, %p3271_p9  ;;  %p2877_p1 = por %p2876_p10, %p2875_p8 }
  0x4b   : > { %p2871_p6 = pneg %p2870_p3 }
  0x4d   : > { %p2878_p5 = pnand %p2877_p1, %p2871_p6 }
  0x4f   : > { %2881 = shalt.err (!%p2878_p5)
}
  0x50   : > { %2697 = dma.hbm_to_vmem [thread:$0]  (!%p3259_p7), %s3922_s7, 64, %s3255_s26, [#allocation12]  }
  0x51   : > { %s2345_s29 = sadd.s32 4294967294, %s3138_s20   ;;  %s3320_s30 = sadd.s32 1, %s3138_s20  }
  0x52   : > { %3923 = sst [smem:[#allocation26_spill]] %s3320_s30  ;;  %s40_s12 = sadd.s32 1, %s3134_s19 }
  0x53   : > { %s37_s13 = ssub.s32 %s3138_s20, %s3320_s30  ;;  %p47_p11 = scmp.ne.s32.totalorder %s3134_s19, %s3130_s18 }
  0x54   : > { %p38_p12 = scmp.eq.s32.totalorder %s37_s13, 0  ;;  %p48_p13 = scmp.eq.s32.totalorder %s3138_s20, 0 }
  0x55   : > { %p53_p0 = scmp.ne.s32.totalorder %s3130_s18, %s3126_s17  ;;  %p3332_p3 = por %p297_p2, %p47_p11 }
  0x56   : > { %s3337_s16 = scalar_select %p38_p12, %s3134_s19, %s40_s12  }
  0x57   : > { %s3924_s15 = scalar_select %p3332_p3, 1, 0 }
  0x58   : > { %3926 = sst [smem:[#allocation28_spill]] %s3337_s16  ;;  %p49_p6 = por %p48_p13, %p47_p11 }
  0x59   : > { %3925 = sst [smem:[#allocation27_spill]] %s3924_s15  ;;  %p3927_p8 = scmp.eq.s32.totalorder %s3240_s23, 0 }
  0x5a   : > { %p303_p1 = scmp.eq.s32.totalorder %s2345_s29, 1  ;;  %p2723_p5 = scmp.lt.s32.totalorder %s3138_s20, 2 }
  0x5b   : > { %p3341_p10 = por %p3927_p8, %p53_p0  ;;  %s3882_s21 = sand.u32 1, %s3134_s19  }
  0x5c   : > { %s3348_s22 = sshll.u32 %s3138_s20, 8  ;;  %p3350_p4 = por %p303_p1, %p53_p0 }
  0x5d   : > { %s3928_s26 = scalar_select %p3341_p10, 1, 0 }
  0x5e   : > { %s3929_s10 = scalar_select %p3350_p4, 1, 0 }
  0x5f   : > { %s3356_s11 = sshll.u32 %s3882_s21, 4  ;;  %p3358_p2 = pnand %p2723_p5, %p49_p6 }
  0x60   : > { %3930 = sst [smem:[#allocation29_spill]] %s3929_s10  ;;  %s412_s13 = sand.u32 1, %s3138_s20  }
  0x61   : > { %s3931_s12 = scalar_select %p3358_p2, 1, 0 }
  0x62   : > { %s3932_s1 = sld [smem:[#allocation30_spill]]  ;;  %s416_s4 = scalar_lea.vmem [#allocation5], %s3356_s11 }
  0x63   : > { %s423_s7 = sshll.u32 %s416_s4, 4  ;;  %s3144_s21 = smov [#allocation10]   ;;  %s3370_s7 = int_to_ptr.vmem [resolvable:$true] %s423_s7 }
  0x64   : > { %s3372_s16 = sshll.u32 %s3144_s21, 4  ;;  %s3374_s30 = scalar_lea.sflag [#allocation6], %s412_s13  ;;  %s342_s16 = int_to_ptr.vmem [resolvable:$true] %s3372_s16 }
  0x65   : > { %p3380_p12 = pneg %p3358_p2 }
  0x67   : > { %s3933_s25 = scalar_select %p3380_p12, 1, 0 }
  0x68   : > { %s3367_s28 = scalar_lea.hbm %s3932_s1, %s3348_s22  ;;  %s2887_s20 = scalar_lea.hbm %s3932_s1, 512 }
  0x69   : > { %s2882_s10 = scalar_lea.hbm %s3367_s28, 256  ;;  %p2888_p6 = scmp.lt.u32.totalorder %s3367_s28, %s3932_s1 }
  0x6a   : > { %p2883_p11 = scmp.ne.s32.totalorder %s3367_s28, %s2882_s10  ;;  %p2889_p8 = scmp.lt.u32.totalorder %s2887_s20, %s2882_s10 }
  0x6b   : > { %p2891_p5 = scmp.lt.u32.totalorder %s2882_s10, %s3367_s28 }
  0x6c   : > { %p2885_p13 = pnand %p3380_p12, %p2883_p11  ;;  %p2890_p1 = por %p2889_p8, %p2888_p6 }
  0x6e   : > { %p2886_p0 = pneg %p2885_p13  ;;  %p2892_p4 = por %p2891_p5, %p2890_p1 }
  0x70   : > { %p2893_p3 = pnand %p2892_p4, %p2886_p0 }
  0x72   : > { %2896 = shalt.err (!%p2893_p3)
}
  0x73   : > { %s2897_s13 = scalar_lea.vmem %s3370_s7, 256  ;;  %s3145_s29 = smov [#allocation5]  }
  0x74   : > { %p2898_p11 = scmp.ne.s32.totalorder %s3370_s7, %s2897_s13  ;;  %s2902_s4 = sshll.u32 %s3145_s29, 4  ;;  %s2903_s4 = int_to_ptr.vmem [resolvable:$false] %s2902_s4 }
  0x75   : > { %s2904_s17 = scalar_lea.vmem %s2903_s4, 512  ;;  %p2905_p7 = scmp.lt.s32.totalorder %s3370_s7, %s2903_s4 }
  0x76   : > { %p2900_p13 = pnand %p2898_p11, %p3380_p12  ;;  %p2906_p9 = scmp.lt.s32.totalorder %s2904_s17, %s2897_s13 }
  0x78   : > { %p2901_p10 = pneg %p2900_p13  ;;  %p2907_p6 = por %p2906_p9, %p2905_p7 }
  0x7a   : > { %p2908_p8 = pnand %p2907_p6, %p2901_p10 }
  0x7c   : > { %2911 = shalt.err (!%p2908_p8)
}
  0x7d   : > { %s3899_s20 = smov 128   ;;  %s3901_s10 = smov 8  }
  0x7e   : > { %2710 = dma.hbm_to_vmem [thread:$0]  (!%p3358_p2), %s3367_s28, 256, %s3370_s7, %s3374_s30, %s3899_s20, %s3899_s20, %s3901_s10  }
  0x7f   : > { %s2912_s13 = scalar_lea.hbm %s3871_s6, 256  ;;  %p3934_p7 = scmp.ne.s32.totalorder %s3921_s14, 0 }
  0x80   : > { %p2913_p4 = scmp.ne.s32.totalorder %s3871_s6, %s2912_s13  ;;  %p2919_p10 = scmp.lt.u32.totalorder %s2912_s13, %s3871_s6 }
  0x82   : > { %p2915_p9 = pnand %p2913_p4, %p3934_p7 }
  0x84   : > { %p2916_p3 = pneg %p2915_p9 }
  0x86   : > { %p2921_p0 = pnand %p2919_p10, %p2916_p3 }
  0x88   : > { %2924 = shalt.err (!%p2921_p0)
}
  0x89   : > { %s2925_s5 = scalar_lea.vmem %s342_s16, 256  ;;  %p2933_p13 = scmp.lt.s32.totalorder %s342_s16, %s342_s16 }
  0x8a   : > { %p2926_p1 = scmp.ne.s32.totalorder %s342_s16, %s2925_s5  ;;  %p2934_p6 = scmp.lt.s32.totalorder %s2925_s5, %s2925_s5 }
  0x8c   : > { %p2928_p5 = pnand %p2926_p1, %p3934_p7  ;;  %p2935_p8 = por %p2934_p6, %p2933_p13 }
  0x8e   : > { %p2929_p11 = pneg %p2928_p5 }
  0x90   : > { %p2936_p2 = pnand %p2935_p8, %p2929_p11 }
  0x92   : > { %2939 = shalt.err (!%p2936_p2)
}
  0x93   : > { %p3935_p4 = scmp.ne.s32.totalorder %s3919_s27, 0  ;;  %s3936_s7 = smov 4  }
  0x94   : > { %s3937_s28 = smov 64   ;;  %s3148_s21 = smov [#allocation13]  }
  0x95   : > { %2694 = dma.hbm_to_vmem [thread:$0]  (!%p3935_p4), %s3871_s6, 256, %s342_s16, [#allocation9], %s3937_s28, %s3937_s28, %s3936_s7  }
  0x96   : > { %s366_s29 = sshll.u32 %s3148_s21, 4  ;;  %s3149_s13 = smov [#allocation14]   ;;  %s367_s29 = int_to_ptr.vmem [resolvable:$true] %s366_s29 }
  0x97   : > { %s377_s4 = sshll.u32 %s3149_s13, 4  ;;  %s2940_s20 = scalar_lea.hbm %s3873_s8, 64  ;;  %s378_s4 = int_to_ptr.vmem [resolvable:$true] %s377_s4 }
  0x98   : > { %p2941_p2 = scmp.ne.s32.totalorder %s3873_s8, %s2940_s20  ;;  %p2947_p10 = scmp.lt.u32.totalorder %s2940_s20, %s3873_s8 }
  0x9a   : > { %p2943_p9 = pnand %p2941_p2, %p3934_p7 }
  0x9c   : > { %p2944_p3 = pneg %p2943_p9 }
  0x9e   : > { %p2949_p0 = pnand %p2947_p10, %p2944_p3 }
  0xa0   : > { %2952 = shalt.err (!%p2949_p0)
}
  0xa1   : > { %s2953_s16 = scalar_lea.vmem %s367_s29, 64  ;;  %p2961_p13 = scmp.lt.s32.totalorder %s367_s29, %s367_s29 }
  0xa2   : > { %p2954_p1 = scmp.ne.s32.totalorder %s367_s29, %s2953_s16  ;;  %p2962_p6 = scmp.lt.s32.totalorder %s2953_s16, %s2953_s16 }
  0xa4   : > { %p2956_p5 = pnand %p2954_p1, %p3934_p7  ;;  %p2963_p8 = por %p2962_p6, %p2961_p13 }
  0xa6   : > { %p2957_p11 = pneg %p2956_p5 }
  0xa8   : > { %p2964_p12 = pnand %p2963_p8, %p2957_p11 }
  0xaa   : > { %2967 = shalt.err (!%p2964_p12)
}
  0xab   : > { %2700 = dma.hbm_to_vmem [thread:$0]  (!%p3935_p4), %s3873_s8, 64, %s367_s29, [#allocation12]  }
  0xac   : > { %s2968_s7 = scalar_lea.hbm %s3874_s9, 64 }
  0xad   : > { %p2969_p2 = scmp.ne.s32.totalorder %s3874_s9, %s2968_s7  ;;  %p2975_p12 = scmp.lt.u32.totalorder %s2968_s7, %s3874_s9 }
  0xaf   : > { %p2971_p9 = pnand %p2969_p2, %p3934_p7 }
  0xb1   : > { %p2972_p3 = pneg %p2971_p9 }
  0xb3   : > { %p2977_p10 = pnand %p2975_p12, %p2972_p3 }
  0xb5   : > { %2980 = shalt.err (!%p2977_p10)
}
  0xb6   : > { %s2981_s17 = scalar_lea.vmem %s378_s4, 64  ;;  %p2989_p11 = scmp.lt.s32.totalorder %s378_s4, %s378_s4 }
  0xb7   : > { %p2982_p0 = scmp.ne.s32.totalorder %s378_s4, %s2981_s17  ;;  %p2990_p13 = scmp.lt.s32.totalorder %s2981_s17, %s2981_s17 }
  0xb9   : > { %p2984_p1 = pnand %p2982_p0, %p3934_p7  ;;  %p2991_p6 = por %p2990_p13, %p2989_p11 }
  0xbb   : > { %p2985_p5 = pneg %p2984_p1 }
  0xbd   : > { %p2992_p8 = pnand %p2991_p6, %p2985_p5 }
  0xbf   : > { %2995 = shalt.err (!%p2992_p8)
}
  0xc0   : > { %2703 = dma.hbm_to_vmem [thread:$0]  (!%p3935_p4), %s3874_s9, 64, %s378_s4, [#allocation15]  }
  0xc1   : > { %s3469_s16 = scalar_lea.hbm %s3865_s0, %s3348_s22  ;;  %s395_s3 = scalar_lea.vmem [#allocation2], %s3356_s11 }
  0xc2   : > { %s402_s27 = sshll.u32 %s395_s3, 4  ;;  %s3478_s20 = scalar_lea.hbm %s3867_s2, %s3348_s22  ;;  %s3472_s27 = int_to_ptr.vmem [resolvable:$true] %s402_s27 }
  0xc3   : > { %s3938_s7 = sand.u32 1, %s3134_s19   ;;  %s2996_s28 = scalar_lea.hbm %s3469_s16, 256 }
  0xc4   : > { %s3482_s4 = scalar_lea.sflag [#allocation3], %s3938_s7  ;;  %p2997_p7 = scmp.ne.s32.totalorder %s3469_s16, %s2996_s28 }
  0xc5   : > { %p3939_p4 = scmp.ne.s32.totalorder %s3933_s25, 0  ;;  %s3001_s13 = scalar_lea.hbm %s3865_s0, 512 }
  0xc6   : > { %p3002_p3 = scmp.lt.u32.totalorder %s3469_s16, %s3865_s0  ;;  %p3003_p12 = scmp.lt.u32.totalorder %s3001_s13, %s2996_s28 }
  0xc7   : > { %p2999_p2 = pnand %p2997_p7, %p3939_p4  ;;  %p3005_p0 = scmp.lt.u32.totalorder %s2996_s28, %s3469_s16 }
  0xc8   : > { %p3004_p10 = por %p3003_p12, %p3002_p3 }
  0xc9   : > { %p3000_p9 = pneg %p2999_p2 }
  0xca   : > { %p3006_p1 = por %p3005_p0, %p3004_p10 }
  0xcc   : > { %p3007_p5 = pnand %p3006_p1, %p3000_p9 }
  0xce   : > { %3010 = shalt.err (!%p3007_p5)
}
  0xcf   : > { %s3011_s22 = scalar_lea.vmem %s3472_s27, 256  ;;  %s3150_s5 = smov [#allocation2]  }
  0xd0   : > { %p3012_p11 = scmp.ne.s32.totalorder %s3472_s27, %s3011_s22  ;;  %s3016_s1 = sshll.u32 %s3150_s5, 4  ;;  %s3017_s1 = int_to_ptr.vmem [resolvable:$false] %s3016_s1 }
  0xd1   : > { %s3018_s14 = scalar_lea.vmem %s3017_s1, 512  ;;  %p3019_p8 = scmp.lt.s32.totalorder %s3472_s27, %s3017_s1 }
  0xd2   : > { %p3014_p13 = pnand %p3012_p11, %p3939_p4  ;;  %p3020_p7 = scmp.lt.s32.totalorder %s3018_s14, %s3011_s22 }
  0xd4   : > { %p3015_p6 = pneg %p3014_p13  ;;  %p3021_p2 = por %p3020_p7, %p3019_p8 }
  0xd6   : > { %p3022_p3 = pnand %p3021_p2, %p3015_p6 }
  0xd8   : > { %3025 = shalt.err (!%p3022_p3)
}
  0xd9   : > { %p3940_p9 = scmp.ne.s32.totalorder %s3931_s12, 0  ;;  %s3941_s3 = smov 8  }
  0xda   : > { %s3942_s10 = smov 128   ;;  %s437_s23 = scalar_lea.vmem [#allocation7], %s3356_s11 }
  0xdb   : > { %2707 = dma.hbm_to_vmem [thread:$0]  (!%p3940_p9), %s3469_s16, 256, %s3472_s27, %s3482_s4, %s3942_s10, %s3942_s10, %s3941_s3  }
  0xdc   : > { %s444_s7 = sshll.u32 %s437_s23, 4  ;;  %s3026_s28 = scalar_lea.hbm %s3478_s20, 256  ;;  %s3510_s7 = int_to_ptr.vmem [resolvable:$true] %s444_s7 }
  0xdd   : > { %p3027_p12 = scmp.ne.s32.totalorder %s3478_s20, %s3026_s28  ;;  %s3031_s13 = scalar_lea.hbm %s3867_s2, 512 }
  0xde   : > { %p3032_p1 = scmp.lt.u32.totalorder %s3478_s20, %s3867_s2  ;;  %p3033_p5 = scmp.lt.u32.totalorder %s3031_s13, %s3026_s28 }
  0xdf   : > { %p3029_p10 = pnand %p3027_p12, %p3939_p4  ;;  %p3035_p13 = scmp.lt.u32.totalorder %s3026_s28, %s3478_s20 }
  0xe0   : > { %p3034_p11 = por %p3033_p5, %p3032_p1 }
  0xe1   : > { %p3030_p0 = pneg %p3029_p10 }
  0xe2   : > { %p3036_p6 = por %p3035_p13, %p3034_p11 }
  0xe4   : > { %p3037_p8 = pnand %p3036_p6, %p3030_p0 }
  0xe6   : > { %3040 = shalt.err (!%p3037_p8)
}
  0xe7   : > { %s3041_s11 = scalar_lea.vmem %s3510_s7, 256  ;;  %s3151_s16 = smov [#allocation7]  }
  0xe8   : > { %p3042_p7 = scmp.ne.s32.totalorder %s3510_s7, %s3041_s11  ;;  %s3046_s27 = sshll.u32 %s3151_s16, 4  ;;  %s3047_s27 = int_to_ptr.vmem [resolvable:$false] %s3046_s27 }
  0xe9   : > { %s3048_s4 = scalar_lea.vmem %s3047_s27, 512  ;;  %p3049_p12 = scmp.lt.s32.totalorder %s3510_s7, %s3047_s27 }
  0xea   : > { %p3044_p2 = pnand %p3042_p7, %p3939_p4  ;;  %p3050_p10 = scmp.lt.s32.totalorder %s3048_s4, %s3041_s11 }
  0xec   : > { %p3045_p3 = pneg %p3044_p2  ;;  %p3051_p1 = por %p3050_p10, %p3049_p12 }
  0xee   : > { %p3052_p5 = pnand %p3051_p1, %p3045_p3 }
  0xf0   : > { %3055 = shalt.err (!%p3052_p5)
}
  0xf1   : > { %2713 = dma.hbm_to_vmem [thread:$0]  (!%p3940_p9), %s3478_s20, 256, %s3510_s7, %s3374_s30, %s3942_s10, %s3942_s10, %s3941_s3  }
  0xf2   : > { %p3943_p4 = scmp.ne.s32.totalorder %s3918_s24, 0 }
  0xf3   : > { %s3540_s25 = sand.u32 (!%p3943_p4), 1, %s3130_s18   ;;  %p3944_p0 = scmp.ne.s32.totalorder (!%p3943_p4), %s3928_s26, 0 }
  0xf4   : > { %456 = sbr.rel (%p3943_p4) target bundleno = 3896 (0xf38), region = 64  ;;  %s3543_s22 = sshll.u32 (!%p3943_p4), %s3540_s25, 4 }
  0xf5   : > { %s459_s12 = scalar_lea.sflag (!%p3943_p4), [#allocation3], %s3540_s25  ;;  %s462_s5 = scalar_lea.vmem (!%p3943_p4), [#allocation2], %s3543_s22 }
  0xfb   : > { %3101 = dma.done.wait (%p3944_p0), %s459_s12, 256  }
  0xfc   : > { %3103 = vsyncadd (%p3944_p0), %s459_s12, 4294967040  ;;  %s3945_s30 = sld [smem:[#allocation25_spill]]  ;;  %s471_s1 = scalar_lea.vmem [#allocation5], %s3543_s22 }
 0x102   : > { %s467_s24 = sand.u32 1, %s3945_s30  }
 0x103   : > { %s468_s20 = scalar_lea.sflag [#allocation6], %s467_s24 }
 0x104   : > { %3105 = dma.done.wait (%p3944_p0), %s468_s20, 512  }
 0x105   : > { %3107 = vsyncadd (%p3944_p0), %s468_s20, 4294966784  ;;  %s480_s14 = scalar_lea.vmem [#allocation7], %s3543_s22  ;;  %p3946_p9 = scmp.eq.s32.totalorder %s3945_s30, 0 }
 0x107   : > { %3109 = dma.done.wait (%p3946_p9), [#allocation9], 512   ;;  %p3947_p11 = pmov %p3946_p9 }
 0x108   : > { %p3948_p13 = pmov %p3946_p9 }
 0x109   : > { %3111 = vsyncadd (%p3947_p11), [#allocation9], 4294966784 }
 0x10a   : > { %3113 = dma.done.wait (%p3948_p13), [#allocation12], 128   ;;  %p3949_p6 = pmov %p3946_p9 }
 0x10c   : > { %3115 = vsyncadd (%p3949_p6), [#allocation12], 4294967168  ;;  %p3950_p8 = pmov %p3949_p6 }
 0x10d   : > { %p3951_p7 = pmov %p3949_p6 }
 0x10e   : > { %3117 = dma.done.wait (%p3950_p8), [#allocation15], 64  }
 0x10f   : > { %3119 = vsyncadd (%p3951_p7), [#allocation15], 4294967232  ;;  %v3152_v0 = vmov 0.0   ;;  %vm3153_vm0 = vmmov 0   ;;  %vm569_vm1 = vcmask 261120   ;;  %s3952_s10 = sld [smem:[#allocation31_spill]] }
 0x110   : > { %2490 = vmatprep.subr.bf16.mxu1 %v3152_v0  ;;  %2484 = vmatprep.subr.bf16.mxu0 %v3152_v0  ;;  %v621_v1 = vld [vmem:[#allocation8] sm:$0xf]  ;;  %v558_v6 = vld [vmem:[%s471_s1 + $0x8] sm:$0xff]  ;;  %s3953_s28 = sld [smem:[#allocation33_spill]]  ;;  %v2374_v16 = vld [vmem:[#allocation13] ss:$0 sm:$0xff] }
 0x111   : > { %2492 = vmatprep.mubr.msk.bf16.mxu1 %vm3153_vm0, %v3152_v0  ;;  %2486 = vmatprep.mubr.msk.bf16.mxu0 %vm3153_vm0, %v3152_v0  ;;  %v631_v3 = vsel %vm569_vm1, %v621_v1, 0  ;;  %v557_v5 = vld [vmem:[%s471_s1] sm:$0xff]  ;;  %v555_v8 = vld [vmem:[%s462_s5 + $0x8] sm:$0xff]  ;;  %vm737_vm2 = vcmask 64512   ;;  %vm857_vm3 = vcmask 1043456   ;;  %s3154_s20 = smov 16  }
 0x112   : > { %2491 = vmatpush3.bf16.xpose.msra.mxu1 %v631_v3  ;;  %v554_v7 = vld [vmem:[%s462_s5] sm:$0xff]  ;;  %v3590_v10 = vpack.c.bf16 %v558_v6, %v557_v5  ;;  %v561_v14 = vld [vmem:[%s480_s14 + $0x8] sm:$0xff]  ;;  %s3155_s1 = smov 8   ;;  %vm2089_vm4 = vcmask 130048   ;;  %vm2092_vm5 = vcmask 195584   ;;  %s3954_s23 = sld [smem:[#allocation35_spill]] }
 0x113   : > { %2502 = vmatprep.subr.bf16.mxu1 %v3152_v0  ;;  %v3592_v11 = vpack.c.bf16 %v555_v8, %v554_v7  ;;  %v560_v13 = vld [vmem:[%s480_s14] sm:$0xff]  ;;  %v2376_v42 = vld [vmem:[#allocation14] ss:$0 sm:$0xff]  ;;  %s3156_s14 = smov 24   ;;  %s3955_s7 = sld [smem:[#allocation27_spill]] }
 0x114   : > { %v3608_v15 = vpack.c.bf16 %v561_v14, %v560_v13  ;;  %v2372_v17 = vld [vmem:[#allocation11] ss:$0 sm:$0xff]  ;;  %s2424_s15 = sshll.u32 %s3945_s30, 8  ;;  %s548_s21 = scalar_lea.vmem [#allocation16], %s3543_s22 }
 0x115   : > { %v563_v2 = vld [vmem:[%s3952_s10] sm:$0xf]  ;;  %s2181_s13 = sshll.u32 %s548_s21, 4  ;;  %s3956_s11 = sld [smem:[#allocation36_spill]]  ;;  %s3819_s13 = int_to_ptr.vmem [resolvable:$true] %s2181_s13 }
 0x116   : > { %v574_v4 = vsel %vm569_vm1, %v563_v2, 0  ;;  %v676_v9 = vld [vmem:[%s3953_s28] sm:$0xf]  ;;  %s2168_s22 = scalar_lea.sflag [#allocation4], %s3540_s25  ;;  %s3056_s30 = scalar_lea.vmem %s3819_s13, 256 }
 0x117   : > { %2485 = vmatpush3.bf16.xpose.msra.mxu0 %v574_v4  ;;  %v686_v12 = vsel %vm569_vm1, %v676_v9, 0  ;;  %p3057_p2 = scmp.ne.s32.totalorder %s3819_s13, %s3056_s30  ;;  %s3157_s27 = smov [#allocation16]  }
 0x118   : > { %2496 = vmatprep.subr.bf16.mxu0 %v3152_v0  ;;  %s3060_s4 = sshll.u32 %s3157_s27, 4  ;;  %s3061_s4 = int_to_ptr.vmem [resolvable:$false] %s3060_s4 }
 0x119   : > { %2493 = vmatmul.mubr.msk.bf16.vlgmr.msra.gmra.mrb[0].mxu1 %vm569_vm1, %v3590_v10  ;;  %p3957_p3 = scmp.ne.s32.totalorder %s3955_s7, 0  ;;  %s3062_s12 = scalar_lea.vmem %s3061_s4, 512 }
 0x11a   : > { %2504 = vmatprep.mubr.msk.bf16.mxu1 %vm3153_vm0, %v3152_v0  ;;  %p3063_p1 = scmp.lt.s32.totalorder %s3819_s13, %s3061_s4  ;;  %p3064_p5 = scmp.lt.s32.totalorder %s3062_s12, %s3056_s30 }
 0x11b   : > { %s3816_s16 = scalar_lea.hbm %s3956_s11, %s2424_s15  ;;  %p3058_p12 = pnand %p3057_p2, %p3957_p3 }
 0x11c   : > { %p3065_p4 = por %p3064_p5, %p3063_p1 }
 0x11d   : > { %p3059_p10 = pneg %p3058_p12 }
 0x11e   : > { %2487 = vmatmul.mubr.msk.bf16.vlgmr.msra.gmra.mrb[0].mxu0 %vm569_vm1, %v3592_v11 }
 0x11f   : > { %2497 = vmatpush3.bf16.xpose.msra.mxu0 %v686_v12  ;;  %2498 = vmatprep.mubr.msk.bf16.mxu0 %vm3153_vm0, %v3152_v0  ;;  %p3066_p0 = pnand %p3065_p4, %p3059_p10 }
 0x120   : > { %2508 = vmatprep.subr.bf16.mxu0 %v3152_v0 }
 0x126   : > { %2499 = vmatmul.mubr.msk.bf16.vlgmr.msra.gmra.mrb[4].mxu0 %vm569_vm1, %v3608_v15 }
 0x127   : > { %2510 = vmatprep.mubr.msk.bf16.mxu0 %vm3153_vm0, %v3152_v0 }
 0x1ec   : > { %v667_v18 = vpop.f32.mrb[0].mxu1 }
 0x1ed   : > { %v668_v20 = vadd.f32 %v2374_v16, %v667_v18  ;;  %v2494_v21 = vpop.f32.mrb[1].mxu1  ;;  %v1001_v18 = vld [vmem:[#allocation8 + $0x4] sm:$0xf] }
 0x1ee   : > { %v670_v24 = vpop.f32.mrb[2].mxu1  ;;  %v1008_v21 = vsel %vm569_vm1, %v1001_v18, 0 }
 0x1ef   : > { %v674_v26 = vmax.f32 %v668_v20, 0.0  ;;  %v671_v27 = vadd.f32 %v2374_v16, %v670_v24  ;;  %v2495_v29 = vpop.f32.mrb[3].mxu1 }
 0x1f1   : > { %v610_v19 = vpop.f32.mrb[0].mxu0  ;;  %v733_v32 = vpack.c.bf16 %v674_v26, %v674_v26  ;;  %v675_v33 = vmax.f32 %v671_v27, 0.0  ;;  %v1053_v27 = vld [vmem:[%s3953_s28 + $0x4] sm:$0xf] }
 0x1f2   : > { %v611_v22 = vadd.f32 %v2372_v17, %v610_v19  ;;  %v2488_v23 = vpop.f32.mrb[1].mxu0 }
 0x1f3   : > { %v613_v25 = vpop.f32.mrb[2].mxu0  ;;  %v734_v34 = vpack.c.bf16 %v675_v33, %v675_v33  ;;  %v742_v37 = vsel %vm737_vm2, %v733_v32, 0  ;;  %v947_v23 = vld [vmem:[%s3952_s10 + $0x4] sm:$0xf] }
 0x1f4   : > { %v617_v28 = vmax.f32 %v611_v22, 0.0  ;;  %v614_v30 = vadd.f32 %v2372_v17, %v613_v25  ;;  %v2489_v31 = vpop.f32.mrb[3].mxu0  ;;  %2503 = vmatpush3.bf16.xpose.msra.mxu1 %v742_v37  ;;  %v954_v26 = vsel %vm569_vm1, %v947_v23, 0 }
 0x1f5   : > { %v788_v38 = vsel %vm737_vm2, %v734_v34, 0  ;;  %2514 = vmatprep.subr.bf16.mxu1 %v3152_v0 }
 0x1f6   : > { %v619_v35 = vmul.f32 0.35355338, %v617_v28  ;;  %v618_v36 = vmax.f32 %v614_v30, 0.0  ;;  %2509 = vmatpush3.bf16.xpose.msra.mxu0 %v788_v38  ;;  %v1060_v28 = vsel %vm569_vm1, %v1053_v27, 0 }
 0x1f7   : > { %2520 = vmatprep.subr.bf16.mxu0 %v3152_v0 }
 0x1f8   : > { %v731_v39 = vpack.c.bf16 %v619_v35, %v619_v35  ;;  %v620_v40 = vmul.f32 0.35355338, %v618_v36  ;;  %v2384_v36 = vld [vmem:[#allocation13 + $0x1] ss:$0 sm:$0xff] }
 0x1f9   : > { %v722_v43 = vpop.f32.mrb[4].mxu0 }
 0x1fa   : > { %v732_v41 = vpack.c.bf16 %v620_v40, %v620_v40  ;;  %v723_v44 = vadd.f32 %v2376_v42, %v722_v43  ;;  %v2500_v45 = vpop.f32.mrb[5].mxu0 }
 0x1fb   : > { %2505 = vmatmul.mubr.msk.bf16.vlgmr.msra.gmra.mrb[4].mxu1 %vm737_vm2, %v731_v39  ;;  %v725_v46 = vpop.f32.mrb[6].mxu0 }
 0x1fc   : > { %2516 = vmatprep.mubr.msk.bf16.mxu1 %vm3153_vm0, %v3152_v0  ;;  %v729_v47 = vmax.f32 %v723_v44, 0.0  ;;  %v726_v48 = vadd.f32 %v2376_v42, %v725_v46  ;;  %v2501_v49 = vpop.f32.mrb[7].mxu0  ;;  %v2382_v42 = vld [vmem:[#allocation11 + $0x1] ss:$0 sm:$0xff] }
 0x1fd   : > { %2511 = vmatmul.mubr.msk.bf16.vlgmr.msra.gmra.mrb[8].mxu0 %vm737_vm2, %v732_v41 }
 0x1fe   : > { %2522 = vmatprep.mubr.msk.bf16.mxu0 %vm3153_vm0, %v3152_v0  ;;  %v730_v50 = vmax.f32 %v726_v48, 0.0  ;;  %v735_v51 = vpack.c.bf16 %v729_v47, %v729_v47 }
 0x200   : > { %v736_v52 = vpack.c.bf16 %v730_v50, %v730_v50  ;;  %v859_v53 = vsel %vm857_vm3, %v735_v51, 0 }
 0x201   : > { %2515 = vmatpush3.bf16.msra.mxu1 %v859_v53 }
 0x202   : > { %v905_v54 = vsel %vm857_vm3, %v736_v52, 0  ;;  %2526 = vmatprep.subr.bf16.mxu1 %v3152_v0 }
 0x203   : > { %2521 = vmatpush3.bf16.msra.mxu0 %v905_v54 }
 0x204   : > { %2532 = vmatprep.subr.bf16.mxu0 %v3152_v0 }
 0x2ce   : > { %v778_v55 = vpop.f32.mrb[4].mxu1 }
 0x2cf   : > { %v2506_v56 = vpop.f32.mrb[5].mxu1  ;;  %v830_v1 = vsel %vm737_vm2, %v778_v55, -inf }
 0x2d0   : > { %v781_v57 = vpop.f32.mrb[6].mxu1  ;;  %v824_v58 = vpop.f32.mrb[8].mxu0 }
 0x2d1   : > { %v2507_v59 = vpop.f32.mrb[7].mxu1  ;;  %v2512_v60 = vpop.f32.mrb[9].mxu0  ;;  %v833_v61 = vsel %vm737_vm2, %v824_v58, -inf }
 0x2d2   : > { %834 = vmax.xlane.f32.xlu0 %v833_v61  ;;  %v827_v62 = vpop.f32.mrb[10].mxu0 }
 0x2d3   : > { %v2513_v63 = vpop.f32.mrb[11].mxu0 }
 0x2d4   : > { %v2386_v63 = vld [vmem:[#allocation14 + $0x1] ss:$0 sm:$0xff] }
 0x2d6   : > { %831 = vmax.xlane.f32.xlu0 %v830_v1 }
 0x35f   : > { %v835_v2 = vpop.xlane.xlu0 %834 }
 0x360   : > { %v837_v3 = vsub.f32 %v824_v58, %v835_v2 }
 0x362   : > { %v840_v4 = vmul.f32 1.442695, %v837_v3 }
 0x363   : > { %v832_v5 = vpop.xlane.xlu0 %831 }
 0x364   : > { %2794 = vpow2.f32 %v840_v4  ;;  %v836_v6 = vsub.f32 %v778_v55, %v832_v5 }
 0x366   : > { %v838_v7 = vmul.f32 1.442695, %v836_v6 }
 0x368   : > { %2796 = vpow2.f32 %v838_v7 }
 0x36e   : > { %v2795_v8 = vpop.eup %2794 }
 0x36f   : > { %v845_v9 = vsel %vm737_vm2, %v2795_v8, 0.0 }
 0x370   : > { %846 = vadd.xlane.f32.xlu1 %v845_v9 }
 0x372   : > { %v2797_v12 = vpop.eup %2796 }
 0x373   : > { %v842_v13 = vsel %vm737_vm2, %v2797_v12, 0.0 }
 0x374   : > { %843 = vadd.xlane.f32.xlu1 %v842_v13 }
 0x3fd   : > { %v847_v14 = vpop.xlane.xlu1 %846 }
 0x3fe   : > { %2798 = vrcp.f32 %v847_v14 }
 0x401   : > { %v844_v16 = vpop.xlane.xlu1 %843 }
 0x402   : > { %2800 = vrcp.f32 %v844_v16 }
 0x408   : > { %v2799_v17 = vpop.eup %2798 }
 0x409   : > { %v851_v19 = vmul.f32 %v2799_v17, %v2795_v8 }
 0x40b   : > { %v853_v20 = vpack.c.bf16 %v851_v19, %v851_v19 }
 0x40c   : > { %v2801_v22 = vpop.eup %2800 }
 0x40d   : > { %v850_v24 = vmul.f32 %v2801_v22, %v2797_v12  ;;  %2523 = vmatmul.mubr.msk.bf16.vlgmr.msra.gmra.mrb[12].mxu0 %vm737_vm2, %v853_v20 }
 0x40e   : > { %2533 = vmatpush3.bf16.xpose.msra.mxu0 %v1008_v21  ;;  %2534 = vmatprep.mubr.msk.bf16.mxu0 %vm3153_vm0, %v3152_v0 }
 0x40f   : > { %v852_v25 = vpack.c.bf16 %v850_v24, %v850_v24  ;;  %2544 = vmatprep.subr.bf16.mxu0 %v3152_v0 }
 0x411   : > { %2517 = vmatmul.mubr.msk.bf16.vlgmr.msra.gmra.mrb[8].mxu1 %vm737_vm2, %v852_v25 }
 0x412   : > { %2527 = vmatpush3.bf16.xpose.msra.mxu1 %v954_v26  ;;  %2528 = vmatprep.mubr.msk.bf16.mxu1 %vm3153_vm0, %v3152_v0 }
 0x413   : > { %2538 = vmatprep.subr.bf16.mxu1 %v3152_v0 }
 0x415   : > { %2535 = vmatmul.mubr.msk.bf16.vlgmr.msra.gmra.mrb[16].mxu0 %vm569_vm1, %v3590_v10 }
 0x416   : > { %2546 = vmatprep.mubr.msk.bf16.mxu0 %vm3153_vm0, %v3152_v0 }
 0x419   : > { %2529 = vmatmul.mubr.msk.bf16.vlgmr.msra.gmra.mrb[12].mxu1 %vm569_vm1, %v3592_v11 }
 0x41a   : > { %2540 = vmatprep.mubr.msk.bf16.mxu1 %vm3153_vm0, %v3152_v0  ;;  %2539 = vmatpush3.bf16.xpose.msra.mxu1 %v1060_v28 }
 0x41b   : > { %2550 = vmatprep.subr.bf16.mxu1 %v3152_v0 }
 0x421   : > { %2541 = vmatmul.mubr.msk.bf16.vlgmr.msra.gmra.mrb[16].mxu1 %vm569_vm1, %v3608_v15 }
 0x422   : > { %2552 = vmatprep.mubr.msk.bf16.mxu1 %vm3153_vm0, %v3152_v0 }
 0x4e0   : > { %v3662_v29 = vpop.f32.mrb[12].mxu0 }
 0x4e1   : > { %v2524_v30 = vpop.f32.mrb[13].mxu0 }
 0x4e2   : > { %v944_v31 = vpop.f32.mrb[14].mxu0 }
 0x4e3   : > { %v2525_v32 = vpop.f32.mrb[15].mxu0 }
 0x4e4   : > { %v3664_v33 = vpop.f32.mrb[8].mxu1 }
 0x4e5   : > { %v2518_v34 = vpop.f32.mrb[9].mxu1 }
 0x4e6   : > { %v898_v35 = vpop.f32.mrb[10].mxu1 }
 0x4e7   : > { %v2519_v37 = vpop.f32.mrb[11].mxu1 }
 0x4e8   : > { %v1044_v38 = vpop.f32.mrb[16].mxu0 }
 0x4e9   : > { %v1045_v39 = vadd.f32 %v2384_v36, %v1044_v38  ;;  %v2536_v40 = vpop.f32.mrb[17].mxu0 }
 0x4ea   : > { %v1047_v41 = vpop.f32.mrb[18].mxu0 }
 0x4eb   : > { %v1051_v43 = vmax.f32 %v1045_v39, 0.0  ;;  %v1048_v44 = vadd.f32 %v2384_v36, %v1047_v41  ;;  %v2537_v45 = vpop.f32.mrb[19].mxu0  ;;  %v1319_v41 = vld [vmem:[%s3952_s10 + $0x8] sm:$0xf] }
 0x4ec   : > { %v990_v46 = vpop.f32.mrb[12].mxu1 }
 0x4ed   : > { %v1107_v47 = vpack.c.bf16 %v1051_v43, %v1051_v43  ;;  %v1052_v48 = vmax.f32 %v1048_v44, 0.0  ;;  %v991_v49 = vadd.f32 %v2382_v42, %v990_v46  ;;  %v2530_v50 = vpop.f32.mrb[13].mxu1  ;;  %v1373_v44 = vld [vmem:[#allocation8 + $0x8] sm:$0xf] }
 0x4ee   : > { %v993_v51 = vpop.f32.mrb[14].mxu1  ;;  %v1425_v50 = vld [vmem:[%s3953_s28 + $0x8] sm:$0xf] }
 0x4ef   : > { %v1108_v52 = vpack.c.bf16 %v1052_v48, %v1052_v48  ;;  %v997_v53 = vmax.f32 %v991_v49, 0.0  ;;  %v994_v54 = vadd.f32 %v2382_v42, %v993_v51  ;;  %v2531_v55 = vpop.f32.mrb[15].mxu1  ;;  %v1115_v56 = vsel %vm737_vm2, %v1107_v47, 0 }
 0x4f0   : > { %2545 = vmatpush3.bf16.xpose.msra.mxu0 %v1115_v56  ;;  %v1326_v47 = vsel %vm569_vm1, %v1319_v41, 0  ;;  %v1380_v49 = vsel %vm569_vm1, %v1373_v44, 0  ;;  %v1432_v51 = vsel %vm569_vm1, %v1425_v50, 0 }
 0x4f1   : > { %v999_v57 = vmul.f32 0.35355338, %v997_v53  ;;  %v998_v58 = vmax.f32 %v994_v54, 0.0  ;;  %v1161_v59 = vsel %vm737_vm2, %v1108_v52, 0  ;;  %2556 = vmatprep.subr.bf16.mxu0 %v3152_v0 }
 0x4f2   : > { %2551 = vmatpush3.bf16.xpose.msra.mxu1 %v1161_v59 }
 0x4f3   : > { %v1105_v60 = vpack.c.bf16 %v999_v57, %v999_v57  ;;  %v1000_v61 = vmul.f32 0.35355338, %v998_v58  ;;  %2562 = vmatprep.subr.bf16.mxu1 %v3152_v0 }
 0x4f4   : > { %v1096_v1 = vpop.f32.mrb[16].mxu1 }
 0x4f5   : > { %v1106_v62 = vpack.c.bf16 %v1000_v61, %v1000_v61  ;;  %v1097_v2 = vadd.f32 %v2386_v63, %v1096_v1  ;;  %v2542_v3 = vpop.f32.mrb[17].mxu1  ;;  %v2392_v61 = vld [vmem:[#allocation11 + $0x2] ss:$0 sm:$0xff] }
 0x4f6   : > { %v1099_v4 = vpop.f32.mrb[18].mxu1 }
 0x4f7   : > { %2547 = vmatmul.mubr.msk.bf16.vlgmr.msra.gmra.mrb[20].mxu0 %vm737_vm2, %v1105_v60  ;;  %v1103_v5 = vmax.f32 %v1097_v2, 0.0  ;;  %v1100_v6 = vadd.f32 %v2386_v63, %v1099_v4  ;;  %v2543_v7 = vpop.f32.mrb[19].mxu1 }
 0x4f8   : > { %2558 = vmatprep.mubr.msk.bf16.mxu0 %vm3153_vm0, %v3152_v0 }
 0x4f9   : > { %2553 = vmatmul.mubr.msk.bf16.vlgmr.msra.gmra.mrb[20].mxu1 %vm737_vm2, %v1106_v62  ;;  %v1104_v8 = vmax.f32 %v1100_v6, 0.0  ;;  %v1109_v9 = vpack.c.bf16 %v1103_v5, %v1103_v5  ;;  %v2394_v62 = vld [vmem:[#allocation13 + $0x2] ss:$0 sm:$0xff] }
 0x4fa   : > { %2564 = vmatprep.mubr.msk.bf16.mxu1 %vm3153_vm0, %v3152_v0 }
 0x4fb   : > { %v1110_v12 = vpack.c.bf16 %v1104_v8, %v1104_v8  ;;  %v1231_v13 = vsel %vm857_vm3, %v1109_v9, 0 }
 0x4fc   : > { %2557 = vmatpush3.bf16.msra.mxu0 %v1231_v13 }
 0x4fd   : > { %v1277_v14 = vsel %vm857_vm3, %v1110_v12, 0  ;;  %2568 = vmatprep.subr.bf16.mxu0 %v3152_v0 }
 0x4fe   : > { %2563 = vmatpush3.bf16.msra.mxu1 %v1277_v14 }
 0x4ff   : > { %2574 = vmatprep.subr.bf16.mxu1 %v3152_v0 }
 0x5ca   : > { %v1151_v16 = vpop.f32.mrb[20].mxu0 }
 0x5cb   : > { %v2548_v17 = vpop.f32.mrb[21].mxu0  ;;  %v1203_v18 = vsel %vm737_vm2, %v1151_v16, -inf }
 0x5cc   : > { %v1197_v19 = vpop.f32.mrb[20].mxu1  ;;  %1204 = vmax.xlane.f32.xlu1 %v1203_v18  ;;  %v1154_v20 = vpop.f32.mrb[22].mxu0 }
 0x5cd   : > { %v2549_v21 = vpop.f32.mrb[23].mxu0  ;;  %v2554_v22 = vpop.f32.mrb[21].mxu1  ;;  %v1206_v23 = vsel %vm737_vm2, %v1197_v19, -inf }
 0x5ce   : > { %1207 = vmax.xlane.f32.xlu0 %v1206_v23  ;;  %v1200_v24 = vpop.f32.mrb[22].mxu1 }
 0x5cf   : > { %v2555_v25 = vpop.f32.mrb[23].mxu1 }
 0x659   : > { %v1205_v26 = vpop.xlane.xlu1 %1204 }
 0x65a   : > { %v1209_v27 = vsub.f32 %v1151_v16, %v1205_v26 }
 0x65b   : > { %v1208_v28 = vpop.xlane.xlu0 %1207 }
 0x65c   : > { %v1211_v30 = vmul.f32 1.442695, %v1209_v27  ;;  %v1210_v31 = vsub.f32 %v1197_v19, %v1208_v28  ;;  %v2396_v27 = vld [vmem:[#allocation14 + $0x2] ss:$0 sm:$0xff] }
 0x65e   : > { %2802 = vpow2.f32 %v1211_v30  ;;  %v1213_v32 = vmul.f32 1.442695, %v1210_v31 }
 0x660   : > { %2804 = vpow2.f32 %v1213_v32 }
 0x668   : > { %v2803_v34 = vpop.eup %2802 }
 0x669   : > { %v1215_v35 = vsel %vm737_vm2, %v2803_v34, 0.0 }
 0x66a   : > { %v2805_v36 = vpop.eup %2804  ;;  %1216 = vadd.xlane.f32.xlu1 %v1215_v35 }
 0x66b   : > { %v1218_v37 = vsel %vm737_vm2, %v2805_v36, 0.0 }
 0x66c   : > { %1219 = vadd.xlane.f32.xlu0 %v1218_v37 }
 0x6f7   : > { %v1217_v38 = vpop.xlane.xlu1 %1216 }
 0x6f8   : > { %2806 = vrcp.f32 %v1217_v38 }
 0x6f9   : > { %v1220_v39 = vpop.xlane.xlu0 %1219 }
 0x6fa   : > { %2808 = vrcp.f32 %v1220_v39 }
 0x702   : > { %v2807_v40 = vpop.eup %2806 }
 0x703   : > { %v1223_v42 = vmul.f32 %v2807_v40, %v2803_v34 }
 0x704   : > { %v2809_v43 = vpop.eup %2808 }
 0x705   : > { %v1224_v45 = vmul.f32 %v2809_v43, %v2805_v36  ;;  %v1225_v46 = vpack.c.bf16 %v1223_v42, %v1223_v42 }
 0x707   : > { %2559 = vmatmul.mubr.msk.bf16.vlgmr.msra.gmra.mrb[24].mxu0 %vm737_vm2, %v1225_v46  ;;  %v1226_v48 = vpack.c.bf16 %v1224_v45, %v1224_v45 }
 0x708   : > { %2569 = vmatpush3.bf16.xpose.msra.mxu0 %v1326_v47  ;;  %2570 = vmatprep.mubr.msk.bf16.mxu0 %vm3153_vm0, %v3152_v0 }
 0x709   : > { %2565 = vmatmul.mubr.msk.bf16.vlgmr.msra.gmra.mrb[24].mxu1 %vm737_vm2, %v1226_v48  ;;  %2580 = vmatprep.subr.bf16.mxu0 %v3152_v0 }
 0x70a   : > { %2575 = vmatpush3.bf16.xpose.msra.mxu1 %v1380_v49  ;;  %2576 = vmatprep.mubr.msk.bf16.mxu1 %vm3153_vm0, %v3152_v0 }
 0x70b   : > { %2586 = vmatprep.subr.bf16.mxu1 %v3152_v0 }
 0x70f   : > { %2571 = vmatmul.mubr.msk.bf16.vlgmr.msra.gmra.mrb[28].mxu0 %vm569_vm1, %v3592_v11 }
 0x710   : > { %2582 = vmatprep.mubr.msk.bf16.mxu0 %vm3153_vm0, %v3152_v0  ;;  %2581 = vmatpush3.bf16.xpose.msra.mxu0 %v1432_v51 }
 0x711   : > { %2577 = vmatmul.mubr.msk.bf16.vlgmr.msra.gmra.mrb[28].mxu1 %vm569_vm1, %v3590_v10  ;;  %2592 = vmatprep.subr.bf16.mxu0 %v3152_v0 }
 0x712   : > { %2588 = vmatprep.mubr.msk.bf16.mxu1 %vm3153_vm0, %v3152_v0 }
 0x717   : > { %2583 = vmatmul.mubr.msk.bf16.vlgmr.msra.gmra.mrb[32].mxu0 %vm569_vm1, %v3608_v15 }
 0x718   : > { %2594 = vmatprep.mubr.msk.bf16.mxu0 %vm3153_vm0, %v3152_v0 }
 0x7da   : > { %v3714_v52 = vpop.f32.mrb[24].mxu0 }
 0x7db   : > { %v2560_v53 = vpop.f32.mrb[25].mxu0 }
 0x7dc   : > { %v1270_v54 = vpop.f32.mrb[26].mxu0  ;;  %v3716_v55 = vpop.f32.mrb[24].mxu1 }
 0x7dd   : > { %v2777_v56 = vpack.i.bf16 %v3716_v55, %v3714_v52  ;;  %v2561_v57 = vpop.f32.mrb[27].mxu0  ;;  %v2566_v58 = vpop.f32.mrb[25].mxu1  ;;  %v2793_v52 = vld [vmem:[#allocation10 + $0x8] sm:$0xff]  }
 0x7de   : > { %v1316_v59 = vpop.f32.mrb[26].mxu1 }
 0x7df   : > { %v2567_v60 = vpop.f32.mrb[27].mxu1 }
 0x7e2   : > { %v1362_v63 = vpop.f32.mrb[28].mxu0 }
 0x7e3   : > { %v1363_v1 = vadd.f32 %v2392_v61, %v1362_v63  ;;  %v2572_v2 = vpop.f32.mrb[29].mxu0 }
 0x7e4   : > { %v1416_v3 = vpop.f32.mrb[28].mxu1  ;;  %v1365_v4 = vpop.f32.mrb[30].mxu0 }
 0x7e5   : > { %v1417_v5 = vadd.f32 %v2394_v62, %v1416_v3  ;;  %v2578_v6 = vpop.f32.mrb[29].mxu1  ;;  %v2573_v7 = vpop.f32.mrb[31].mxu0  ;;  %v1369_v13 = vmax.f32 %v1363_v1, 0.0  ;;  %v1366_v16 = vadd.f32 %v2392_v61, %v1365_v4 }
 0x7e6   : > { %v1419_v8 = vpop.f32.mrb[30].mxu1 }
 0x7e7   : > { %v1423_v9 = vmax.f32 %v1417_v5, 0.0  ;;  %v1420_v12 = vadd.f32 %v2394_v62, %v1419_v8  ;;  %v2579_v14 = vpop.f32.mrb[31].mxu1  ;;  %v1371_v20 = vmul.f32 0.35355338, %v1369_v13  ;;  %v1370_v21 = vmax.f32 %v1366_v16, 0.0 }
 0x7e8   : > { %v1691_v5 = vld [vmem:[%s3952_s10 + $0xc] sm:$0xf] }
 0x7e9   : > { %v1479_v17 = vpack.c.bf16 %v1423_v9, %v1423_v9  ;;  %v1424_v18 = vmax.f32 %v1420_v12, 0.0  ;;  %v1477_v24 = vpack.c.bf16 %v1371_v20, %v1371_v20  ;;  %v1372_v25 = vmul.f32 0.35355338, %v1370_v21  ;;  %v1745_v8 = vld [vmem:[#allocation8 + $0xc] sm:$0xf] }
 0x7ea   : > { %v1468_v28 = vpop.f32.mrb[32].mxu0  ;;  %v1698_v13 = vsel %vm569_vm1, %v1691_v5, 0  ;;  %v1752_v16 = vsel %vm569_vm1, %v1745_v8, 0 }
 0x7eb   : > { %v1480_v19 = vpack.c.bf16 %v1424_v18, %v1424_v18  ;;  %v1487_v22 = vsel %vm737_vm2, %v1479_v17, 0  ;;  %v1478_v26 = vpack.c.bf16 %v1372_v25, %v1372_v25  ;;  %v1469_v30 = vadd.f32 %v2396_v27, %v1468_v28  ;;  %v2584_v31 = vpop.f32.mrb[33].mxu0  ;;  %v1797_v17 = vld [vmem:[%s3953_s28 + $0xc] sm:$0xf] }
 0x7ec   : > { %2587 = vmatpush3.bf16.xpose.msra.mxu1 %v1487_v22  ;;  %v1471_v32 = vpop.f32.mrb[34].mxu0  ;;  %v1804_v18 = vsel %vm569_vm1, %v1797_v17, 0 }
 0x7ed   : > { %v1533_v23 = vsel %vm737_vm2, %v1480_v19, 0  ;;  %2598 = vmatprep.subr.bf16.mxu1 %v3152_v0  ;;  %v1472_v34 = vadd.f32 %v2396_v27, %v1471_v32  ;;  %v2585_v35 = vpop.f32.mrb[35].mxu0  ;;  %v1475_v36 = vmax.f32 %v1469_v30, 0.0  ;;  %v2404_v27 = vld [vmem:[#allocation13 + $0x3] ss:$0 sm:$0xff] }
 0x7ee   : > { %2593 = vmatpush3.bf16.xpose.msra.mxu0 %v1533_v23 }
 0x7ef   : > { %2604 = vmatprep.subr.bf16.mxu0 %v3152_v0  ;;  %v1476_v37 = vmax.f32 %v1472_v34, 0.0  ;;  %v1481_v38 = vpack.c.bf16 %v1475_v36, %v1475_v36 }
 0x7f1   : > { %v1482_v39 = vpack.c.bf16 %v1476_v37, %v1476_v37  ;;  %v1603_v40 = vsel %vm857_vm3, %v1481_v38, 0 }
 0x7f3   : > { %2589 = vmatmul.mubr.msk.bf16.vlgmr.msra.gmra.mrb[32].mxu1 %vm737_vm2, %v1477_v24  ;;  %v1649_v41 = vsel %vm857_vm3, %v1482_v39, 0 }
 0x7f4   : > { %2600 = vmatprep.mubr.msk.bf16.mxu1 %vm3153_vm0, %v3152_v0  ;;  %2599 = vmatpush3.bf16.msra.mxu1 %v1603_v40 }
 0x7f5   : > { %2595 = vmatmul.mubr.msk.bf16.vlgmr.msra.gmra.mrb[36].mxu0 %vm737_vm2, %v1478_v26  ;;  %2610 = vmatprep.subr.bf16.mxu1 %v3152_v0  ;;  %v2402_v26 = vld [vmem:[#allocation11 + $0x3] ss:$0 sm:$0xff] }
 0x7f6   : > { %2606 = vmatprep.mubr.msk.bf16.mxu0 %vm3153_vm0, %v3152_v0  ;;  %2605 = vmatpush3.bf16.msra.mxu0 %v1649_v41 }
 0x7f7   : > { %2616 = vmatprep.subr.bf16.mxu0 %v3152_v0 }
 0x8c6   : > { %v1523_v42 = vpop.f32.mrb[32].mxu1 }
 0x8c7   : > { %v2590_v43 = vpop.f32.mrb[33].mxu1  ;;  %v1575_v44 = vsel %vm737_vm2, %v1523_v42, -inf }
 0x8c8   : > { %1576 = vmax.xlane.f32.xlu1 %v1575_v44  ;;  %v1526_v45 = vpop.f32.mrb[34].mxu1  ;;  %v1569_v46 = vpop.f32.mrb[36].mxu0 }
 0x8c9   : > { %v2591_v47 = vpop.f32.mrb[35].mxu1  ;;  %v2596_v48 = vpop.f32.mrb[37].mxu0  ;;  %v1578_v49 = vsel %vm737_vm2, %v1569_v46, -inf }
 0x8ca   : > { %1579 = vmax.xlane.f32.xlu0 %v1578_v49  ;;  %v1572_v50 = vpop.f32.mrb[38].mxu0 }
 0x8cb   : > { %v2597_v51 = vpop.f32.mrb[39].mxu0 }
 0x955   : > { %v1577_v53 = vpop.xlane.xlu1 %1576 }
 0x956   : > { %v1581_v54 = vsub.f32 %v1523_v42, %v1577_v53 }
 0x957   : > { %v1580_v57 = vpop.xlane.xlu0 %1579 }
 0x958   : > { %v1583_v58 = vmul.f32 1.442695, %v1581_v54  ;;  %v1582_v59 = vsub.f32 %v1569_v46, %v1580_v57  ;;  %v2406_v54 = vld [vmem:[#allocation14 + $0x3] ss:$0 sm:$0xff] }
 0x95a   : > { %2810 = vpow2.f32 %v1583_v58  ;;  %v1585_v60 = vmul.f32 1.442695, %v1582_v59 }
 0x95c   : > { %2812 = vpow2.f32 %v1585_v60 }
 0x964   : > { %v2811_v61 = vpop.eup %2810 }
 0x965   : > { %v1587_v62 = vsel %vm737_vm2, %v2811_v61, 0.0 }
 0x966   : > { %v2813_v63 = vpop.eup %2812  ;;  %1588 = vadd.xlane.f32.xlu1 %v1587_v62 }
 0x967   : > { %v1590_v1 = vsel %vm737_vm2, %v2813_v63, 0.0 }
 0x968   : > { %1591 = vadd.xlane.f32.xlu0 %v1590_v1 }
 0x9f3   : > { %v1589_v2 = vpop.xlane.xlu1 %1588 }
 0x9f4   : > { %2814 = vrcp.f32 %v1589_v2 }
 0x9f5   : > { %v1592_v3 = vpop.xlane.xlu0 %1591 }
 0x9f6   : > { %2816 = vrcp.f32 %v1592_v3 }
 0x9fe   : > { %v2815_v4 = vpop.eup %2814 }
 0x9ff   : > { %v1595_v6 = vmul.f32 %v2815_v4, %v2811_v61 }
 0xa00   : > { %v2817_v7 = vpop.eup %2816 }
 0xa01   : > { %v1596_v9 = vmul.f32 %v2817_v7, %v2813_v63  ;;  %v1597_v12 = vpack.c.bf16 %v1595_v6, %v1595_v6 }
 0xa03   : > { %2601 = vmatmul.mubr.msk.bf16.vlgmr.msra.gmra.mrb[36].mxu1 %vm737_vm2, %v1597_v12  ;;  %v1598_v14 = vpack.c.bf16 %v1596_v9, %v1596_v9 }
 0xa04   : > { %2611 = vmatpush3.bf16.xpose.msra.mxu1 %v1698_v13  ;;  %2612 = vmatprep.mubr.msk.bf16.mxu1 %vm3153_vm0, %v3152_v0 }
 0xa05   : > { %2607 = vmatmul.mubr.msk.bf16.vlgmr.msra.gmra.mrb[40].mxu0 %vm737_vm2, %v1598_v14  ;;  %2622 = vmatprep.subr.bf16.mxu1 %v3152_v0 }
 0xa06   : > { %2617 = vmatpush3.bf16.xpose.msra.mxu0 %v1752_v16  ;;  %2618 = vmatprep.mubr.msk.bf16.mxu0 %vm3153_vm0, %v3152_v0 }
 0xa07   : > { %2628 = vmatprep.subr.bf16.mxu0 %v3152_v0 }
 0xa0b   : > { %2613 = vmatmul.mubr.msk.bf16.vlgmr.msra.gmra.mrb[40].mxu1 %vm569_vm1, %v3592_v11 }
 0xa0c   : > { %2624 = vmatprep.mubr.msk.bf16.mxu1 %vm3153_vm0, %v3152_v0  ;;  %2623 = vmatpush3.bf16.xpose.msra.mxu1 %v1804_v18 }
 0xa0d   : > { %2619 = vmatmul.mubr.msk.bf16.vlgmr.msra.gmra.mrb[44].mxu0 %vm569_vm1, %v3590_v10  ;;  %2634 = vmatprep.subr.bf16.mxu1 %v3152_v0 }
 0xa0e   : > { %2630 = vmatprep.mubr.msk.bf16.mxu0 %vm3153_vm0, %v3152_v0 }
 0xa13   : > { %2625 = vmatmul.mubr.msk.bf16.vlgmr.msra.gmra.mrb[44].mxu1 %vm569_vm1, %v3608_v15 }
 0xa14   : > { %2636 = vmatprep.mubr.msk.bf16.mxu1 %vm3153_vm0, %v3152_v0 }
 0xad6   : > { %v3768_v11 = vpop.f32.mrb[36].mxu1 }
 0xad7   : > { %v2602_v10 = vpop.f32.mrb[37].mxu1 }
 0xad8   : > { %v1642_v19 = vpop.f32.mrb[38].mxu1  ;;  %v3770_v20 = vpop.f32.mrb[40].mxu0 }
 0xad9   : > { %v2782_v21 = vpack.i.bf16 %v3770_v20, %v3768_v11  ;;  %v2603_v22 = vpop.f32.mrb[39].mxu1  ;;  %v2608_v23 = vpop.f32.mrb[41].mxu0  ;;  %v2792_v11 = vld [vmem:[#allocation10] sm:$0xff]  }
 0xada   : > { %v1688_v24 = vpop.f32.mrb[42].mxu0 }
 0xadb   : > { %v2609_v25 = vpop.f32.mrb[43].mxu0 }
 0xade   : > { %v1734_v28 = vpop.f32.mrb[40].mxu1 }
 0xadf   : > { %v1735_v15 = vadd.f32 %v2402_v26, %v1734_v28  ;;  %v2614_v30 = vpop.f32.mrb[41].mxu1 }
 0xae0   : > { %v1788_v31 = vpop.f32.mrb[44].mxu0  ;;  %v1737_v32 = vpop.f32.mrb[42].mxu1 }
 0xae1   : > { %v1789_v34 = vadd.f32 %v2404_v27, %v1788_v31  ;;  %v2620_v35 = vpop.f32.mrb[45].mxu0  ;;  %v2615_v36 = vpop.f32.mrb[43].mxu1  ;;  %v1741_v41 = vmax.f32 %v1735_v15, 0.0  ;;  %v1738_v42 = vadd.f32 %v2402_v26, %v1737_v32 }
 0xae2   : > { %v1791_v37 = vpop.f32.mrb[46].mxu0 }
 0xae3   : > { %v1795_v38 = vmax.f32 %v1789_v34, 0.0  ;;  %v1792_v39 = vadd.f32 %v2404_v27, %v1791_v37  ;;  %v2621_v40 = vpop.f32.mrb[47].mxu0  ;;  %v1743_v46 = vmul.f32 0.35355338, %v1741_v41  ;;  %v1742_v47 = vmax.f32 %v1738_v42, 0.0 }
 0xae5   : > { %v1851_v43 = vpack.c.bf16 %v1795_v38, %v1795_v38  ;;  %v1796_v44 = vmax.f32 %v1792_v39, 0.0  ;;  %v1849_v50 = vpack.c.bf16 %v1743_v46, %v1743_v46  ;;  %v1744_v51 = vmul.f32 0.35355338, %v1742_v47 }
 0xae6   : > { %v1840_v57 = vpop.f32.mrb[44].mxu1 }
 0xae7   : > { %v1852_v45 = vpack.c.bf16 %v1796_v44, %v1796_v44  ;;  %v1859_v48 = vsel %vm737_vm2, %v1851_v43, 0  ;;  %v1850_v53 = vpack.c.bf16 %v1744_v51, %v1744_v51  ;;  %v1841_v58 = vadd.f32 %v2406_v54, %v1840_v57  ;;  %v2626_v59 = vpop.f32.mrb[45].mxu1 }
 0xae8   : > { %2629 = vmatpush3.bf16.xpose.msra.mxu0 %v1859_v48  ;;  %v1843_v60 = vpop.f32.mrb[46].mxu1 }
 0xae9   : > { %v1905_v49 = vsel %vm737_vm2, %v1852_v45, 0  ;;  %2640 = vmatprep.subr.bf16.mxu0 %v3152_v0  ;;  %v1847_v61 = vmax.f32 %v1841_v58, 0.0  ;;  %v1844_v62 = vadd.f32 %v2406_v54, %v1843_v60  ;;  %v2627_v63 = vpop.f32.mrb[47].mxu1 }
 0xaea   : > { %2635 = vmatpush3.bf16.xpose.msra.mxu1 %v1905_v49 }
 0xaeb   : > { %2646 = vmatprep.subr.bf16.mxu1 %v3152_v0  ;;  %v1848_v1 = vmax.f32 %v1844_v62, 0.0  ;;  %v1853_v2 = vpack.c.bf16 %v1847_v61, %v1847_v61 }
 0xaed   : > { %v1854_v3 = vpack.c.bf16 %v1848_v1, %v1848_v1  ;;  %v1975_v4 = vsel %vm857_vm3, %v1853_v2, 0 }
 0xaef   : > { %2631 = vmatmul.mubr.msk.bf16.vlgmr.msra.gmra.mrb[48].mxu0 %vm737_vm2, %v1849_v50  ;;  %v2021_v5 = vsel %vm857_vm3, %v1854_v3, 0 }
 0xaf0   : > { %2642 = vmatprep.mubr.msk.bf16.mxu0 %vm3153_vm0, %v3152_v0  ;;  %2641 = vmatpush3.bf16.msra.mxu0 %v1975_v4 }
 0xaf1   : > { %2637 = vmatmul.mubr.msk.bf16.vlgmr.msra.gmra.mrb[48].mxu1 %vm737_vm2, %v1850_v53  ;;  %2652 = vmatprep.subr.bf16.mxu0 %v3152_v0 }
 0xaf2   : > { %2648 = vmatprep.mubr.msk.bf16.mxu1 %vm3153_vm0, %v3152_v0  ;;  %2647 = vmatpush3.bf16.msra.mxu1 %v2021_v5 }
 0xbc2   : > { %v1895_v6 = vpop.f32.mrb[48].mxu0 }
 0xbc3   : > { %v2632_v7 = vpop.f32.mrb[49].mxu0  ;;  %v1947_v8 = vsel %vm737_vm2, %v1895_v6, -inf }
 0xbc4   : > { %v1941_v9 = vpop.f32.mrb[48].mxu1  ;;  %1948 = vmax.xlane.f32.xlu0 %v1947_v8  ;;  %v1898_v12 = vpop.f32.mrb[50].mxu0 }
 0xbc5   : > { %v2633_v13 = vpop.f32.mrb[51].mxu0  ;;  %v2638_v14 = vpop.f32.mrb[49].mxu1  ;;  %v1950_v16 = vsel %vm737_vm2, %v1941_v9, -inf }
 0xbc6   : > { %1951 = vmax.xlane.f32.xlu1 %v1950_v16  ;;  %v1944_v17 = vpop.f32.mrb[50].mxu1 }
 0xbc7   : > { %v2639_v18 = vpop.f32.mrb[51].mxu1 }
 0xc51   : > { %v1949_v10 = vpop.xlane.xlu0 %1948 }
 0xc52   : > { %v1953_v19 = vsub.f32 %v1895_v6, %v1949_v10 }
 0xc53   : > { %v1952_v22 = vpop.xlane.xlu1 %1951 }
 0xc54   : > { %v1955_v23 = vmul.f32 1.442695, %v1953_v19  ;;  %v1954_v24 = vsub.f32 %v1941_v9, %v1952_v22 }
 0xc56   : > { %2818 = vpow2.f32 %v1955_v23  ;;  %v1957_v25 = vmul.f32 1.442695, %v1954_v24 }
 0xc58   : > { %2820 = vpow2.f32 %v1957_v25 }
 0xc60   : > { %v2819_v26 = vpop.eup %2818 }
 0xc61   : > { %v1959_v27 = vsel %vm737_vm2, %v2819_v26, 0.0 }
 0xc62   : > { %v2821_v28 = vpop.eup %2820  ;;  %1960 = vadd.xlane.f32.xlu0 %v1959_v27 }
 0xc63   : > { %v1962_v15 = vsel %vm737_vm2, %v2821_v28, 0.0 }
 0xc64   : > { %1963 = vadd.xlane.f32.xlu1 %v1962_v15 }
 0xc75   : > { %2783 = vrot.lane.b32.xlu1 %v2782_v21, %s3154_s20 }
 0xc78   : > { %2778 = vrot.lane.b32.xlu0 %v2777_v56, %s3155_s1 }
 0xcef   : > { %v1961_v30 = vpop.xlane.xlu0 %1960 }
 0xcf0   : > { %2822 = vrcp.f32 %v1961_v30 }
 0xcf1   : > { %v1964_v31 = vpop.xlane.xlu1 %1963 }
 0xcf2   : > { %2824 = vrcp.f32 %v1964_v31 }
 0xcf3   : > { %v2779_v44 = vpop.permute.xlu0 %2778 }
 0xcf4   : > { %v2781_v45 = vunpack.i.h.bf16 %v2779_v44  ;;  %v2780_v46 = vunpack.i.l.bf16 %v2779_v44 }
 0xcf5   : > { %v2784_v47 = vpop.permute.xlu1 %2783 }
 0xcf6   : > { %v2786_v48 = vunpack.i.h.bf16 %v2784_v47  ;;  %v2785_v49 = vunpack.i.l.bf16 %v2784_v47  ;;  %v2087_v50 = vsel %vm737_vm2, %v3664_v33, %v2780_v46 }
 0xcf8   : > { %v2090_v57 = vsel %vm2089_vm4, %v2087_v50, %v2785_v49 }
 0xcfa   : > { %v2823_v32 = vpop.eup %2822 }
 0xcfb   : > { %v1967_v34 = vmul.f32 %v2823_v32, %v2819_v26 }
 0xcfc   : > { %v2825_v35 = vpop.eup %2824 }
 0xcfd   : > { %v1968_v36 = vmul.f32 %v2825_v35, %v2821_v28  ;;  %v1969_v37 = vpack.c.bf16 %v1967_v34, %v1967_v34 }
 0xcff   : > { %2643 = vmatmul.mubr.msk.bf16.vlgmr.msra.gmra.mrb[52].mxu0 %vm737_vm2, %v1969_v37  ;;  %v1970_v38 = vpack.c.bf16 %v1968_v36, %v1968_v36 }
 0xd00   : > { %2656 = vmatprep.mubr.msk.bf16.mxu0 %vm3153_vm0, %v3152_v0  ;;  %2653 = vmatpush3.bf16.msra.mxu0 %v2792_v11 }
 0xd01   : > { %2649 = vmatmul.mubr.msk.bf16.vlgmr.msra.gmra.mrb[52].mxu1 %vm737_vm2, %v1970_v38  ;;  %2654 = vmatprep.subr.bf16.mxu0 %v3152_v0  ;;  %v2088_v0 = vsel %vm737_vm2, %v3662_v29, %v2781_v45  ;;  %v2412_v29 = vld [vmem:[%s3954_s23] ss:$0 sm:$0xff] }
 0xd02   : > { %v2091_v58 = vsel %vm2089_vm4, %v2088_v0, %v2786_v48 }
 0xd04   : > { %2655 = vmatpush3.bf16.msra.mxu0 %v2793_v52 }
 0xdd2   : > { %v2011_v55 = vpop.f32.mrb[52].mxu0 }
 0xdd3   : > { %v2644_v56 = vpop.f32.mrb[53].mxu0 }
 0xdd4   : > { %v2014_v20 = vpop.f32.mrb[54].mxu0  ;;  %v2057_v21 = vpop.f32.mrb[52].mxu1 }
 0xdd5   : > { %v2787_v39 = vpack.i.bf16 %v2057_v21, %v2011_v55  ;;  %v2645_v40 = vpop.f32.mrb[55].mxu0  ;;  %v2650_v41 = vpop.f32.mrb[53].mxu1 }
 0xdd6   : > { %v2060_v42 = vpop.f32.mrb[54].mxu1 }
 0xdd7   : > { %v2651_v43 = vpop.f32.mrb[55].mxu1  ;;  %2788 = vrot.lane.b32.xlu1 %v2787_v39, %s3156_s14 }
 0xe49   : > { %v2789_v51 = vpop.permute.xlu1 %2788 }
 0xe4a   : > { %v2791_v53 = vunpack.i.h.bf16 %v2789_v51  ;;  %v2790_v54 = vunpack.i.l.bf16 %v2789_v51 }
 0xe4c   : > { %v2094_v59 = vsel %vm2092_vm5, %v2091_v58, %v2791_v53  ;;  %v2093_v60 = vsel %vm2092_vm5, %v2090_v57, %v2790_v54 }
 0xe4d   : > { %v2095_v61 = vpack.c.bf16 %v2094_v59, %v2093_v60 }
 0xe4f   : > { %2657 = vmatmul.mubr.msk.bf16.vlgmr.msra.gmra.mrb[56].mxu0 %vm569_vm1, %v2095_v61 }
 0xf22   : > { %v2156_v33 = vpop.f32.mrb[56].mxu0 }
 0xf23   : > { %v2157_v62 = vadd.f32 %v2412_v29, %v2156_v33  ;;  %v2658_v63 = vpop.f32.mrb[57].mxu0 }
 0xf24   : > { %v2159_v1 = vpop.f32.mrb[58].mxu0 }
 0xf25   : > { %v2163_v2 = vmax.f32 %v2157_v62, 0.0  ;;  %v2160_v3 = vadd.f32 %v2412_v29, %v2159_v1  ;;  %v2659_v4 = vpop.f32.mrb[59].mxu0 }
 0xf27   : > { %2165 = vst.msk [vmem:[%s548_s21] sm:$0xff] %vm569_vm1, %v2163_v2  ;;  %v2164_v5 = vmax.f32 %v2160_v3, 0.0 }
 0xf29   : > { %2166 = vst.msk [vmem:[%s548_s21 + $0x8] sm:$0xff] %vm569_vm1, %v2164_v5 }
 0xf2a   : > { %3069 = shalt.err (!%p3066_p0)
}
 0xf2b   : > { %s3070_s5 = scalar_lea.hbm %s3816_s16, 256  ;;  %s3074_s14 = scalar_lea.hbm %s3956_s11, 512 }
 0xf2c   : > { %p3071_p9 = scmp.ne.s32.totalorder %s3816_s16, %s3070_s5  ;;  %p3075_p6 = scmp.lt.u32.totalorder %s3816_s16, %s3956_s11 }
 0xf2d   : > { %p3076_p8 = scmp.lt.u32.totalorder %s3074_s14, %s3070_s5  ;;  %p3078_p2 = scmp.lt.u32.totalorder %s3070_s5, %s3816_s16 }
 0xf2e   : > { %p3072_p11 = pnand %p3071_p9, %p3957_p3 }
 0xf2f   : > { %p3077_p7 = por %p3076_p8, %p3075_p6 }
 0xf30   : > { %p3073_p13 = pneg %p3072_p11 }
 0xf31   : > { %p3079_p12 = por %p3078_p2, %p3077_p7 }
 0xf33   : > { %p3080_p10 = pnand %p3079_p12, %p3073_p13 }
 0xf35   : > { %3083 = shalt.err (!%p3080_p10)
}
 0xf36   : > { %s3158_s23 = smov 128  }
 0xf37   : > { %2686 = dma.vmem_to_hbm [thread:$0]  (%p3957_p3), %s3819_s13, 256, %s3816_s16, %s2168_s22, %s3158_s23, %s3158_s23, %s3155_s1  }
 0xf38 PF: > { %s3958_s15 = sld [smem:[#allocation23_spill]]  ;;  %s3959_s21 = sld [smem:[#allocation29_spill]] }
 0xf39   : > { %s3960_s17 = sld [smem:[#allocation24_spill]] }
 0xf3e   : > { %s2196_s29 = sand.u32 1, %s3958_s15   ;;  %p3961_p1 = scmp.ne.s32.totalorder %s3959_s21, 0 }
 0xf3f   : > { %p3962_p5 = scmp.ge.s32.totalorder %s3960_s17, 2  ;;  %s2197_s30 = scalar_lea.sflag [#allocation4], %s2196_s29 }
 0xf41   : > { %p2715_p4 = pnand %p3962_p5, %p3961_p1 }
 0xf43   : > { %3121 = dma.done.wait (!%p2715_p4), %s2197_s30, 256  }
 0xf44   : > { %3123 = vsyncadd (!%p2715_p4), %s2197_s30, 4294967040  ;;  %s3963_s20 = sld [smem:[#allocation26_spill]]  ;;  %s3964_s7 = sld [smem:[#allocation28_spill]] }
 0xf45   : > { %s3965_s17 = smov %s3130_s18  ;;  %s3966_s18 = smov %s3134_s19 }
 0xf4a   : > { %p30_p0 = scmp.ge.s32.totalorder %s3963_s20, 4   ;;  %s3967_s19 = smov %s3964_s7 }
 0xf4c   :  { %32 = sbr.rel (!%p30_p0) target bundleno = 18 (0x12), region = 153 }
 0xf53   :  { %2202 = vsyncpa [#allocation3], 1 }
 0xf54   :  { %2204 = vsyncpa [#allocation3 + $0x1], 1 }
 0xf55   :  { %2205 = vsyncpa [#allocation6], 1 }
 0xf56   :  { %2207 = vsyncpa [#allocation6 + $0x1], 1 }
 0xf57   :  { %2208 = vsyncpa [#allocation9], 1 }
 0xf58   :  { %2209 = vsyncpa [#allocation12], 1 }
 0xf59   :  { %2210 = vsyncpa [#allocation15], 1 }
 0xf5a   :  { %2211 = vsyncpa [#allocation4], 1 }
 0xf5b   :  { %2213 = vsyncpa [#allocation4 + $0x1], 1 }

</bundles_post_ra>
